<compile_context>
chip_gen: v7x
topology: tpu7x:2x2x1
jax: 0.10.0
libtpu: 0.0.40
codegen_flags: <defaults>
</compile_context>

<pallas_src>
import functools

import numpy as np
import jax
import jax.numpy as jnp
from jax import lax
from jax.experimental import pallas as pl
from jax.experimental.pallas import tpu as pltpu


def _round_up(x, m):
    return ((x + m - 1) // m) * m


# ----------------------------------------------------------------------------
# Anchor generation (plain numpy glue, identical semantics to the reference)
# ----------------------------------------------------------------------------
def generate_anchor_base(base_size=16, ratios=(0.5, 1, 2), anchor_scales=(8, 16, 32)):
    py = base_size / 2.0
    px = base_size / 2.0
    anchor_base = np.zeros((len(ratios) * len(anchor_scales), 4), dtype=np.float32)
    for i in range(len(ratios)):
        for j in range(len(anchor_scales)):
            h = base_size * anchor_scales[j] * np.sqrt(ratios[i])
            w = base_size * anchor_scales[j] * np.sqrt(1.0 / ratios[i])
            index = i * len(anchor_scales) + j
            anchor_base[index, 0] = py - h / 2.0
            anchor_base[index, 1] = px - w / 2.0
            anchor_base[index, 2] = py + h / 2.0
            anchor_base[index, 3] = px + w / 2.0
    return anchor_base


def _enumerate_shifted_anchor(anchor_base, feat_stride, height, width):
    shift_y = np.arange(0, height * feat_stride, feat_stride)
    shift_x = np.arange(0, width * feat_stride, feat_stride)
    shift_x, shift_y = np.meshgrid(shift_x, shift_y)
    shift = np.stack(
        (shift_y.ravel(), shift_x.ravel(), shift_y.ravel(), shift_x.ravel()), axis=1
    )
    A = anchor_base.shape[0]
    K = shift.shape[0]
    anchor = anchor_base.reshape((1, A, 4)) + shift.reshape((1, K, 4)).transpose(
        (1, 0, 2)
    )
    anchor = anchor.reshape((K * A, 4)).astype(np.float32)
    return anchor


# ----------------------------------------------------------------------------
# Kernels
# ----------------------------------------------------------------------------
def _head_and_store(h, wh_ref, bh_ref, fg_lo, fg_hi, out_ref):
    """Fused 1x1 heads: [ loc 4A | score 2A | fg-logit A | zero pad ] -> 128."""
    o = jnp.dot(h, wh_ref[...], preferred_element_type=jnp.float32) + bh_ref[...]
    # fg lane mask: tiny (1, c_pad) iota, broadcast by the where (no full-slab
    # iota / compares).
    lane = lax.broadcasted_iota(jnp.int32, (1, o.shape[-1]), 1)
    is_fg = (lane >= fg_lo) & (lane < fg_hi)
    # softmax([bg, fg])[1] == sigmoid(fg - bg); exp + approx reciprocal both go
    # to the EUP (its own bundle slot).  Clamp so large-negative loc/score/pad
    # logits can't overflow exp to inf (approx sigmoid -> document: ~1e-3 err).
    sig = pl.reciprocal(1.0 + jnp.exp(-jnp.maximum(o, -30.0)), approx=True)
    out_ref[0] = jnp.where(is_fg, sig, o).astype(out_ref.dtype)


def _rpn_taps_kernel(x_ref, w1_ref, b1_ref, wh_ref, bh_ref, out_ref, *,
                     wp, fg_lo, fg_hi):
    """3x3 conv as 9 shifted MXU matmuls on 'wide' rows + fused heads.

    x_ref : (1, (Ht+2)*Wp, Cin) bf16, spatially zero-padded, flattened rows.
    out   : (1, TH*Wp, 128) bf16 for the current (batch, row-tile) grid point.
    """
    cmid = w1_ref.shape[2]
    rows = out_ref.shape[1]                       # TH * Wp, multiple of 8
    t = pl.program_id(1)

    # Three dy-shifted row slabs, loaded once each.  Starts are multiples of 8
    # (Wp and TH*Wp are), on the leading axis -> no unaligned relayout copies.
    x_dy = [x_ref[0, pl.ds(pl.multiple_of(t * rows + dy * wp, 8), rows), :]
            for dy in range(3)]

    # Group the 9 taps by dx; the +dx column shift is applied to the grouped
    # f32 partial sum with one sublane roll per dx (2 rolls total, XLU slot).
    # Bias is folded into the accumulator init (no separate zero-fill + add).
    acc = jnp.broadcast_to(b1_ref[...], (rows, cmid)).astype(jnp.float32)
    for dx in range(3):
        part = jnp.dot(x_dy[0], w1_ref[dx], preferred_element_type=jnp.float32)
        for dy in (1, 2):
            part = part + jnp.dot(x_dy[dy], w1_ref[dy * 3 + dx],
                                  preferred_element_type=jnp.float32)
        if dx:
            # need part[i + dx] at output row i; wrapped rows land only in the
            # discarded c >= W columns.
            part = pltpu.roll(part, shift=rows - dx, axis=0)
        acc = acc + part
    h = jnp.maximum(acc, 0.0).astype(wh_ref.dtype)        # ReLU -> bf16
    _head_and_store(h, wh_ref, bh_ref, fg_lo, fg_hi, out_ref)


def _rpn_im2col_kernel(xc_ref, w1_ref, b1_ref, wh_ref, bh_ref, out_ref, *,
                       fg_lo, fg_hi):
    """Small-Cin path: one (rows, 9*Cin)@(9*Cin, Cmid) matmul + fused heads."""
    acc = jnp.dot(xc_ref[0], w1_ref[...], preferred_element_type=jnp.float32)
    h = jnp.maximum(acc + b1_ref[...], 0.0).astype(wh_ref.dtype)
    _head_and_store(h, wh_ref, bh_ref, fg_lo, fg_hi, out_ref)


# ----------------------------------------------------------------------------
# pallas_call plumbing
# ----------------------------------------------------------------------------
def _invariant_spec(shape, single_buffer):
    """BlockSpec for a grid-invariant operand (constant index_map)."""
    nd = len(shape)

    def index_map(b, t):
        return (0,) * nd

    if single_buffer:
        # Single-buffer the weights: they are DMA'd once anyway; this reclaims
        # the second VMEM buffer (matters at Cin=Cmid=512 on v7x's 64 MiB).
        return pl.BlockSpec(shape, index_map, pipeline_mode=pl.Buffered(1))
    return pl.BlockSpec(shape, index_map)


def _call_with_fallback(make_call, args):
    try:
        return make_call(True)(*args)
    except Exception:
        # pl.Buffered(1) not supported by this jax version -> default buffering.
        return make_call(False)(*args)


def rpn_forward_pallas(x_nchw, params, feat_stride, anchor_base, *, conv_mode="auto"):
    """Forward pass matching RegionProposalNetwork.forward (minus ProposalCreator).

    Returns (rpn_locs, rpn_scores, rpn_fg_scores, anchor).
    """
    w1, b1, wloc, bloc, wsc, bsc = params
    N, Cin, H, W = x_nchw.shape
    Cmid = w1.shape[2]
    A = anchor_base.shape[0]
    HW = H * W

    # ---- fold the 2-way softmax into the score head & fuse all heads --------
    # Score-head channel layout per anchor a is (2a, 2a+1) = (bg, fg), matching
    # the reference's .view(n, h, w, A, 2); assert this when loading real ckpts.
    wd = wsc[:, 1::2] - wsc[:, 0::2]              # (Cmid, A)  fg - bg weights
    bd = bsc[:, 1::2] - bsc[:, 0::2]              # (1, A)
    c_used = 7 * A                                # 4A loc | 2A score | A fg
    c_pad = _round_up(c_used, 128)                # lane-dense output width
    wh = jnp.pad(jnp.concatenate([wloc, wsc, wd], axis=1),
                 ((0, 0), (0, c_pad - c_used))).astype(jnp.bfloat16)
    bh = jnp.pad(jnp.concatenate([bloc, bsc, bd], axis=1),
                 ((0, 0), (0, c_pad - c_used))).astype(jnp.float32)
    fg_lo, fg_hi = 6 * A, 7 * A
    b1_f32 = b1.astype(jnp.float32).reshape(1, Cmid)

    x_nhwc = jnp.transpose(x_nchw, (0, 2, 3, 1)).astype(jnp.bfloat16)

    if conv_mode == "auto":
        conv_mode = "im2col" if Cin <= 64 else "taps"

    cparams = pltpu.CompilerParams(
        dimension_semantics=("parallel", "parallel"),   # batch x row-tile
        vmem_limit_bytes=32 * 1024 * 1024)              # explicit (v5e default 16)

    if conv_mode == "im2col":
        # Small-Cin path (MXU contraction depth >> Cin): build (HW, 9*Cin) in
        # the wrapper, pad K to a lane multiple, one matmul per row tile.
        K = 9 * Cin
        Kp = _round_up(K, 128)
        TM = min(256, _round_up(HW, 8))
        HWp = _round_up(HW, TM)
        xpad = jnp.pad(x_nhwc, ((0, 0), (1, 1), (1, 1), (0, 0)))
        cols = [xpad[:, dy:dy + H, dx:dx + W, :]
                for dy in range(3) for dx in range(3)]
        xcol = jnp.concatenate(cols, axis=-1).reshape(N, HW, K)
        xcol = jnp.pad(xcol, ((0, 0), (0, HWp - HW), (0, Kp - K)))
        w1c = jnp.pad(w1.reshape(K, Cmid), ((0, Kp - K), (0, 0))).astype(jnp.bfloat16)

        grid = (N, HWp // TM)
        kernel = functools.partial(_rpn_im2col_kernel, fg_lo=fg_lo, fg_hi=fg_hi)
        cost = pl.CostEstimate(
            flops=int(2 * N * HWp * Cmid * (Kp + c_pad)),
            transcendentals=int(N * HWp * c_pad),
            bytes_accessed=int((xcol.size + w1c.size + wh.size) * 2
                               + (b1_f32.size + bh.size) * 4
                               + N * HWp * c_pad * 2))

        def make_call(single_buffer):
            return pl.pallas_call(
                kernel,
                out_shape=jax.ShapeDtypeStruct((N, HWp, c_pad), jnp.bfloat16),
                grid=grid,
                in_specs=[
                    pl.BlockSpec((1, TM, Kp), lambda b, t: (b, t, 0)),
                    _invariant_spec((Kp, Cmid), single_buffer),
                    _invariant_spec((1, Cmid), single_buffer),
                    _invariant_spec((Cmid, c_pad), single_buffer),
                    _invariant_spec((1, c_pad), single_buffer),
                ],
                out_specs=pl.BlockSpec((1, TM, c_pad), lambda b, t: (b, t, 0)),
                compiler_params=cparams,
                cost_estimate=cost)

        out = _call_with_fallback(make_call, (xcol, w1c, b1_f32, wh, bh))
        slab = out[:, :HW, :].astype(jnp.float32)                 # (N, HW, 128)
    else:
        # Production-shape path (large Cin): 9-tap matmuls on wide rows, row
        # tiled (TH output rows per grid step, 1-row halo read in-kernel).
        TH = 8
        Ht = _round_up(H, TH)
        Wp = _round_up(W + 2, 8)                 # wide-row width, sublane aligned
        rows = TH * Wp
        xpad = jnp.pad(x_nhwc, ((0, 0), (1, 1 + Ht - H), (1, Wp - W - 1), (0, 0)))
        x_flat = xpad.reshape(N, (Ht + 2) * Wp, Cin)
        w1_bf = w1.astype(jnp.bfloat16)

        grid = (N, Ht // TH)
        kernel = functools.partial(_rpn_taps_kernel, wp=Wp, fg_lo=fg_lo, fg_hi=fg_hi)
        cost = pl.CostEstimate(
            flops=int(2 * N * Ht * Wp * Cmid * (9 * Cin + c_pad)),
            transcendentals=int(N * Ht * Wp * c_pad),
            bytes_accessed=int((x_flat.size + w1_bf.size + wh.size) * 2
                               + (b1_f32.size + bh.size) * 4
                               + N * Ht * Wp * c_pad * 2))

        def make_call(single_buffer):
            return pl.pallas_call(
                kernel,
                out_shape=jax.ShapeDtypeStruct((N, Ht * Wp, c_pad), jnp.bfloat16),
                grid=grid,
                in_specs=[
                    pl.BlockSpec((1, (Ht + 2) * Wp, Cin), lambda b, t: (b, 0, 0)),
                    _invariant_spec((9, Cin, Cmid), single_buffer),
                    _invariant_spec((1, Cmid), single_buffer),
                    _invariant_spec((Cmid, c_pad), single_buffer),
                    _invariant_spec((1, c_pad), single_buffer),
                ],
                out_specs=pl.BlockSpec((1, rows, c_pad), lambda b, t: (b, t, 0)),
                compiler_params=cparams,
                cost_estimate=cost)

        out = _call_with_fallback(make_call, (x_flat, w1_bf, b1_f32, wh, bh))
        slab = out.reshape(N, Ht, Wp, c_pad)[:, :H, :W, :]        # drop wide cols
        slab = slab.reshape(N, HW, c_pad).astype(jnp.float32)

    # Slice the fused lane-dense slab back into the PyTorch output conventions.
    rpn_locs = slab[:, :, :4 * A].reshape(N, HW * A, 4)           # (N, H*W*A, 4)
    rpn_scores = slab[:, :, 4 * A:6 * A].reshape(N, HW * A, 2)    # (N, H*W*A, 2)
    rpn_fg_scores = slab[:, :, 6 * A:7 * A].reshape(N, HW * A)    # (N, H*W*A)

    anchor = _enumerate_shifted_anchor(np.array(anchor_base), feat_stride, H, W)
    # TODO(synk): ProposalCreator (loc2bbox + clipping + NMS -> rois/roi_indices)
    #             is data-dependent host-side logic in the reference and is not
    #             lowered to Pallas; rois / roi_indices are not produced.
    return rpn_locs, rpn_scores, rpn_fg_scores, anchor


# ----------------------------------------------------------------------------
# Pure-JAX f32 reference (for a correctness check of the kernel)
# ----------------------------------------------------------------------------
def rpn_forward_ref(x_nchw, params, A):
    w1, b1, wloc, bloc, wsc, bsc = params
    N, Cin, H, W = x_nchw.shape
    Cmid = w1.shape[2]
    x = jnp.transpose(x_nchw, (0, 2, 3, 1))  # NHWC
    w1_hwio = w1.reshape(3, 3, Cin, Cmid)
    h = lax.conv_general_dilated(
        x, w1_hwio, window_strides=(1, 1), padding="SAME",
        dimension_numbers=("NHWC", "HWIO", "NHWC"),
    ) + b1.reshape(1, 1, 1, Cmid)
    h = jnp.maximum(h, 0.0)
    loc = jnp.einsum("nhwc,cd->nhwd", h, wloc) + bloc.reshape(1, 1, 1, -1)
    sc = jnp.einsum("nhwc,cd->nhwd", h, wsc) + bsc.reshape(1, 1, 1, -1)
    rpn_locs = loc.reshape(N, H * W * A, 4)
    rpn_scores = sc.reshape(N, H * W * A, 2)
    rpn_fg = jax.nn.softmax(sc.reshape(N, H, W, A, 2), axis=-1)[..., 1].reshape(N, -1)
    return rpn_locs, rpn_scores, rpn_fg


# ----------------------------------------------------------------------------
if __name__ == "__main__":
    # Small shapes consistent with the module's forward.
    N, Cin, Cmid, H, W = 2, 8, 32, 16, 16
    feat_stride = 16
    anchor_base = generate_anchor_base(ratios=[0.5, 1, 2], anchor_scales=[8, 16, 32])
    A = anchor_base.shape[0]  # 9

    key = jax.random.PRNGKey(0)
    kx, k1, k2, k3, k4, k5, k6 = jax.random.split(key, 7)

    # Weights ~ N(0, 0.01) like normal_init; small non-zero biases so the
    # bias-fold paths are exercised.  Stored in kernel-friendly layout:
    #   conv1 weight (9, Cin, Cmid) [tap = dy*3+dx], 1x1 heads as (Cmid, out).
    w1 = (0.01 * jax.random.normal(k1, (9, Cin, Cmid))).astype(jnp.float32)
    b1 = (0.01 * jax.random.normal(k4, (1, Cmid))).astype(jnp.float32)
    wloc = (0.01 * jax.random.normal(k2, (Cmid, 4 * A))).astype(jnp.float32)
    bloc = (0.01 * jax.random.normal(k5, (1, 4 * A))).astype(jnp.float32)
    wsc = (0.01 * jax.random.normal(k3, (Cmid, 2 * A))).astype(jnp.float32)
    bsc = (0.01 * jax.random.normal(k6, (1, 2 * A))).astype(jnp.float32)
    params = (w1, b1, wloc, bloc, wsc, bsc)

    x = jax.random.normal(kx, (N, Cin, H, W), jnp.float32)  # NCHW like PyTorch

    ref_locs, ref_scores, ref_fg = rpn_forward_ref(x, params, A)

    # Exercise both conv code paths (im2col = small-Cin default, taps = the
    # production-shape path with pltpu.roll + row tiling).
    for mode in ("im2col", "taps"):
        rpn_locs, rpn_scores, rpn_fg, anchor = rpn_forward_pallas(
            x, params, feat_stride, anchor_base, conv_mode=mode)
        jax.block_until_ready((rpn_locs, rpn_scores, rpn_fg))

        assert rpn_locs.shape == (N, H * W * A, 4)
        assert rpn_scores.shape == (N, H * W * A, 2)
        assert rpn_fg.shape == (N, H * W * A)
        assert anchor.shape == (H * W * A, 4)

        # Tolerances sized for bf16 compute/storage + approximate EUP sigmoid.
        np.testing.assert_allclose(np.asarray(rpn_locs), np.asarray(ref_locs),
                                   rtol=2e-2, atol=2e-3)
        np.testing.assert_allclose(np.asarray(rpn_scores), np.asarray(ref_scores),
                                   rtol=2e-2, atol=2e-3)
        np.testing.assert_allclose(np.asarray(rpn_fg), np.asarray(ref_fg),
                                   rtol=2e-2, atol=2e-3)

    print("KERNEL_OK")
</pallas_src>

<mosaic_0001>
module attributes {stable_mosaic.version = 11 : i64} {
  func.func @_rpn_im2col_kernel(%arg0: i32, %arg1: i32, %arg2: memref<1x256x128xbf16, #tpu.memory_space<vmem>>, %arg3: memref<128x32xbf16, #tpu.memory_space<vmem>>, %arg4: memref<1x32xf32, #tpu.memory_space<vmem>>, %arg5: memref<32x128xbf16, #tpu.memory_space<vmem>>, %arg6: memref<1x128xf32, #tpu.memory_space<vmem>>, %arg7: memref<1x256x128xbf16, #tpu.memory_space<vmem>>) attributes {dimension_semantics = [#tpu.dimension_semantics<parallel>, #tpu.dimension_semantics<parallel>], iteration_bounds = array<i64: 2, 1>, scalar_prefetch = 0 : i64, scratch_operands = 0 : i64, tpu.core_type = #tpu.core_type<tc>, window_params = [{transform_indices = @transform_0, window_bounds = array<i64: 1, 256, 128>}, {pipeline_mode = #tpu.pipeline_mode<synchronous>, transform_indices = @transform_1, window_bounds = array<i64: 128, 32>}, {pipeline_mode = #tpu.pipeline_mode<synchronous>, transform_indices = @transform_2, window_bounds = array<i64: 1, 32>}, {pipeline_mode = #tpu.pipeline_mode<synchronous>, transform_indices = @transform_3, window_bounds = array<i64: 32, 128>}, {pipeline_mode = #tpu.pipeline_mode<synchronous>, transform_indices = @transform_4, window_bounds = array<i64: 1, 128>}, {transform_indices = @transform_5, window_bounds = array<i64: 1, 256, 128>}]} {
    %c0 = arith.constant 0 : index
    %c0_0 = arith.constant 0 : index
    %c0_1 = arith.constant 0 : index
    %0 = vector.load %arg2[%c0, %c0_0, %c0_1] : memref<1x256x128xbf16, #tpu.memory_space<vmem>>, vector<1x256x128xbf16>
    %1 = vector.shape_cast %0 : vector<1x256x128xbf16> to vector<256x128xbf16>
    %c0_2 = arith.constant 0 : index
    %c0_3 = arith.constant 0 : index
    %2 = vector.load %arg3[%c0_2, %c0_3] : memref<128x32xbf16, #tpu.memory_space<vmem>>, vector<128x32xbf16>
    %cst = arith.constant dense<0.000000e+00> : vector<256x32xf32>
    %3 = tpu.matmul %1, %2, %cst {dimension_numbers = #tpu.dot_dimension_numbers<[1], [0], [0], [1], [0, 0, 1, 1], [], []>} : vector<256x128xbf16>, vector<128x32xbf16>, vector<256x32xf32> -> vector<256x32xf32>
    %c0_4 = arith.constant 0 : index
    %c0_5 = arith.constant 0 : index
    %4 = vector.load %arg4[%c0_4, %c0_5] : memref<1x32xf32, #tpu.memory_space<vmem>>, vector<1x32xf32>
    %5 = vector.broadcast %4 : vector<1x32xf32> to vector<256x32xf32>
    %6 = arith.addf %3, %5 : vector<256x32xf32>
    %cst_6 = arith.constant 0.000000e+00 : f32
    %7 = vector.broadcast %cst_6 : f32 to vector<256x32xf32>
    %8 = arith.maximumf %6, %7 : vector<256x32xf32>
    %9 = arith.truncf %8 : vector<256x32xf32> to vector<256x32xbf16>
    %c0_7 = arith.constant 0 : index
    %c0_8 = arith.constant 0 : index
    %10 = vector.load %arg5[%c0_7, %c0_8] : memref<32x128xbf16, #tpu.memory_space<vmem>>, vector<32x128xbf16>
    %cst_9 = arith.constant dense<0.000000e+00> : vector<256x128xf32>
    %11 = tpu.matmul %9, %10, %cst_9 {dimension_numbers = #tpu.dot_dimension_numbers<[1], [0], [0], [1], [0, 0, 1, 1], [], []>} : vector<256x32xbf16>, vector<32x128xbf16>, vector<256x128xf32> -> vector<256x128xf32>
    %c0_10 = arith.constant 0 : index
    %c0_11 = arith.constant 0 : index
    %12 = vector.load %arg6[%c0_10, %c0_11] : memref<1x128xf32, #tpu.memory_space<vmem>>, vector<1x128xf32>
    %13 = vector.broadcast %12 : vector<1x128xf32> to vector<256x128xf32>
    %14 = arith.addf %11, %13 : vector<256x128xf32>
    %15 = tpu.iota {dimensions = array<i32: 1>} : vector<1x128xi32>
    %c54_i32 = arith.constant 54 : i32
    %16 = vector.broadcast %c54_i32 : i32 to vector<1x128xi32>
    %17 = arith.cmpi sge, %15, %16 : vector<1x128xi32>
    %c63_i32 = arith.constant 63 : i32
    %18 = vector.broadcast %c63_i32 : i32 to vector<1x128xi32>
    %19 = arith.cmpi slt, %15, %18 : vector<1x128xi32>
    %20 = arith.andi %17, %19 : vector<1x128xi1>
    %cst_12 = arith.constant -3.000000e+01 : f32
    %21 = vector.broadcast %cst_12 : f32 to vector<256x128xf32>
    %22 = arith.maximumf %14, %21 : vector<256x128xf32>
    %cst_13 = arith.constant 0.000000e+00 : f32
    %23 = vector.broadcast %cst_13 : f32 to vector<256x128xf32>
    %24 = arith.subf %23, %22 : vector<256x128xf32>
    %25 = math.exp %24 : vector<256x128xf32>
    %cst_14 = arith.constant 1.000000e+00 : f32
    %26 = vector.broadcast %cst_14 : f32 to vector<256x128xf32>
    %27 = arith.addf %26, %25 : vector<256x128xf32>
    %28 = tpu.reciprocal %27 {approx = true} : vector<256x128xf32> -> vector<256x128xf32>
    %29 = vector.shape_cast %20 : vector<1x128xi1> to vector<1x128xi1>
    %30 = vector.broadcast %29 : vector<1x128xi1> to vector<256x128xi1>
    %31 = arith.select %30, %28, %14 : vector<256x128xi1>, vector<256x128xf32>
    %32 = arith.truncf %31 : vector<256x128xf32> to vector<256x128xbf16>
    %c0_15 = arith.constant 0 : index
    %c0_16 = arith.constant 0 : index
    %c0_17 = arith.constant 0 : index
    %33 = vector.load %arg7[%c0_15, %c0_16, %c0_17] : memref<1x256x128xbf16, #tpu.memory_space<vmem>>, vector<1x256x128xbf16>
    %34 = vector.shape_cast %33 : vector<1x256x128xbf16> to vector<256x128xbf16>
    %35 = vector.shape_cast %32 : vector<256x128xbf16> to vector<1x256x128xbf16>
    tpu.vector_store %arg7[%c0_15, %c0_16, %c0_17], %35 {strides = array<i32>} : memref<1x256x128xbf16, #tpu.memory_space<vmem>>, vector<1x256x128xbf16>,
    return
  }
  func.func @transform_0(%arg0: i32, %arg1: i32) -> (i32, i32, i32) {
    %c0_i32 = arith.constant 0 : i32
    %c0_i32_0 = arith.constant 0 : i32
    return %arg0, %arg1, %c0_i32 : i32, i32, i32
  }
  func.func @transform_1(%arg0: i32, %arg1: i32) -> (i32, i32) {
    %c0_i32 = arith.constant 0 : i32
    %c0_i32_0 = arith.constant 0 : i32
    %c0_i32_1 = arith.constant 0 : i32
    return %c0_i32, %c0_i32_0 : i32, i32
  }
  func.func @transform_2(%arg0: i32, %arg1: i32) -> (i32, i32) {
    %c0_i32 = arith.constant 0 : i32
    %c0_i32_0 = arith.constant 0 : i32
    %c0_i32_1 = arith.constant 0 : i32
    return %c0_i32, %c0_i32_0 : i32, i32
  }
  func.func @transform_3(%arg0: i32, %arg1: i32) -> (i32, i32) {
    %c0_i32 = arith.constant 0 : i32
    %c0_i32_0 = arith.constant 0 : i32
    %c0_i32_1 = arith.constant 0 : i32
    return %c0_i32, %c0_i32_0 : i32, i32
  }
  func.func @transform_4(%arg0: i32, %arg1: i32) -> (i32, i32) {
    %c0_i32 = arith.constant 0 : i32
    %c0_i32_0 = arith.constant 0 : i32
    %c0_i32_1 = arith.constant 0 : i32
    return %c0_i32, %c0_i32_0 : i32, i32
  }
  func.func @transform_5(%arg0: i32, %arg1: i32) -> (i32, i32, i32) {
    %c0_i32 = arith.constant 0 : i32
    %c0_i32_0 = arith.constant 0 : i32
    return %arg0, %arg1, %c0_i32 : i32, i32, i32
  }
}

module attributes {stable_mosaic.version = 11 : i64} {
  func.func @_rpn_im2col_kernel(%arg0: i32, %arg1: i32, %arg2: memref<1x256x128xbf16, #tpu.memory_space<vmem>>, %arg3: memref<128x32xbf16, #tpu.memory_space<vmem>>, %arg4: memref<1x32xf32, #tpu.memory_space<vmem>>, %arg5: memref<32x128xbf16, #tpu.memory_space<vmem>>, %arg6: memref<1x128xf32, #tpu.memory_space<vmem>>, %arg7: memref<1x256x128xbf16, #tpu.memory_space<vmem>>) attributes {dimension_semantics = [#tpu.dimension_semantics<parallel>, #tpu.dimension_semantics<parallel>], iteration_bounds = array<i64: 2, 1>, scalar_prefetch = 0 : i64, scratch_operands = 0 : i64, tpu.core_type = #tpu.core_type<tc>, window_params = [{transform_indices = @transform_0, window_bounds = array<i64: 1, 256, 128>}, {pipeline_mode = #tpu.pipeline_mode<synchronous>, transform_indices = @transform_1, window_bounds = array<i64: 128, 32>}, {pipeline_mode = #tpu.pipeline_mode<synchronous>, transform_indices = @transform_2, window_bounds = array<i64: 1, 32>}, {pipeline_mode = #tpu.pipeline_mode<synchronous>, transform_indices = @transform_3, window_bounds = array<i64: 32, 128>}, {pipeline_mode = #tpu.pipeline_mode<synchronous>, transform_indices = @transform_4, window_bounds = array<i64: 1, 128>}, {transform_indices = @transform_5, window_bounds = array<i64: 1, 256, 128>}]} {
    %c0 = arith.constant 0 : index
    %c0_0 = arith.constant 0 : index
    %c0_1 = arith.constant 0 : index
    %0 = vector.load %arg2[%c0, %c0_0, %c0_1] : memref<1x256x128xbf16, #tpu.memory_space<vmem>>, vector<1x256x128xbf16>
    %1 = vector.shape_cast %0 : vector<1x256x128xbf16> to vector<256x128xbf16>
    %c0_2 = arith.constant 0 : index
    %c0_3 = arith.constant 0 : index
    %2 = vector.load %arg3[%c0_2, %c0_3] : memref<128x32xbf16, #tpu.memory_space<vmem>>, vector<128x32xbf16>
    %cst = arith.constant dense<0.000000e+00> : vector<256x32xf32>
    %3 = tpu.matmul %1, %2, %cst {dimension_numbers = #tpu.dot_dimension_numbers<[1], [0], [0], [1], [0, 0, 1, 1], [], []>} : vector<256x128xbf16>, vector<128x32xbf16>, vector<256x32xf32> -> vector<256x32xf32>
    %c0_4 = arith.constant 0 : index
    %c0_5 = arith.constant 0 : index
    %4 = vector.load %arg4[%c0_4, %c0_5] : memref<1x32xf32, #tpu.memory_space<vmem>>, vector<1x32xf32>
    %5 = vector.broadcast %4 : vector<1x32xf32> to vector<256x32xf32>
    %6 = arith.addf %3, %5 : vector<256x32xf32>
    %cst_6 = arith.constant 0.000000e+00 : f32
    %7 = vector.broadcast %cst_6 : f32 to vector<256x32xf32>
    %8 = arith.maximumf %6, %7 : vector<256x32xf32>
    %9 = arith.truncf %8 : vector<256x32xf32> to vector<256x32xbf16>
    %c0_7 = arith.constant 0 : index
    %c0_8 = arith.constant 0 : index
    %10 = vector.load %arg5[%c0_7, %c0_8] : memref<32x128xbf16, #tpu.memory_space<vmem>>, vector<32x128xbf16>
    %cst_9 = arith.constant dense<0.000000e+00> : vector<256x128xf32>
    %11 = tpu.matmul %9, %10, %cst_9 {dimension_numbers = #tpu.dot_dimension_numbers<[1], [0], [0], [1], [0, 0, 1, 1], [], []>} : vector<256x32xbf16>, vector<32x128xbf16>, vector<256x128xf32> -> vector<256x128xf32>
    %c0_10 = arith.constant 0 : index
    %c0_11 = arith.constant 0 : index
    %12 = vector.load %arg6[%c0_10, %c0_11] : memref<1x128xf32, #tpu.memory_space<vmem>>, vector<1x128xf32>
    %13 = vector.broadcast %12 : vector<1x128xf32> to vector<256x128xf32>
    %14 = arith.addf %11, %13 : vector<256x128xf32>
    %15 = tpu.iota {dimensions = array<i32: 1>} : vector<1x128xi32>
    %c54_i32 = arith.constant 54 : i32
    %16 = vector.broadcast %c54_i32 : i32 to vector<1x128xi32>
    %17 = arith.cmpi sge, %15, %16 : vector<1x128xi32>
    %c63_i32 = arith.constant 63 : i32
    %18 = vector.broadcast %c63_i32 : i32 to vector<1x128xi32>
    %19 = arith.cmpi slt, %15, %18 : vector<1x128xi32>
    %20 = arith.andi %17, %19 : vector<1x128xi1>
    %cst_12 = arith.constant -3.000000e+01 : f32
    %21 = vector.broadcast %cst_12 : f32 to vector<256x128xf32>
    %22 = arith.maximumf %14, %21 : vector<256x128xf32>
    %cst_13 = arith.constant 0.000000e+00 : f32
    %23 = vector.broadcast %cst_13 : f32 to vector<256x128xf32>
    %24 = arith.subf %23, %22 : vector<256x128xf32>
    %25 = math.exp %24 : vector<256x128xf32>
    %cst_14 = arith.constant 1.000000e+00 : f32
    %26 = vector.broadcast %cst_14 : f32 to vector<256x128xf32>
    %27 = arith.addf %26, %25 : vector<256x128xf32>
    %28 = tpu.reciprocal %27 {approx = true} : vector<256x128xf32> -> vector<256x128xf32>
    %29 = vector.shape_cast %20 : vector<1x128xi1> to vector<1x128xi1>
    %30 = vector.broadcast %29 : vector<1x128xi1> to vector<256x128xi1>
    %31 = arith.select %30, %28, %14 : vector<256x128xi1>, vector<256x128xf32>
    %32 = arith.truncf %31 : vector<256x128xf32> to vector<256x128xbf16>
    %c0_15 = arith.constant 0 : index
    %c0_16 = arith.constant 0 : index
    %c0_17 = arith.constant 0 : index
    %33 = vector.load %arg7[%c0_15, %c0_16, %c0_17] : memref<1x256x128xbf16, #tpu.memory_space<vmem>>, vector<1x256x128xbf16>
    %34 = vector.shape_cast %33 : vector<1x256x128xbf16> to vector<256x128xbf16>
    %35 = vector.shape_cast %32 : vector<256x128xbf16> to vector<1x256x128xbf16>
    tpu.vector_store %arg7[%c0_15, %c0_16, %c0_17], %35 {strides = array<i32>} : memref<1x256x128xbf16, #tpu.memory_space<vmem>>, vector<1x256x128xbf16>,
    return
  }
  func.func @transform_0(%arg0: i32, %arg1: i32) -> (i32, i32, i32) {
    %c0_i32 = arith.constant 0 : i32
    %c0_i32_0 = arith.constant 0 : i32
    return %arg0, %arg1, %c0_i32 : i32, i32, i32
  }
  func.func @transform_1(%arg0: i32, %arg1: i32) -> (i32, i32) {
    %c0_i32 = arith.constant 0 : i32
    %c0_i32_0 = arith.constant 0 : i32
    %c0_i32_1 = arith.constant 0 : i32
    return %c0_i32, %c0_i32_0 : i32, i32
  }
  func.func @transform_2(%arg0: i32, %arg1: i32) -> (i32, i32) {
    %c0_i32 = arith.constant 0 : i32
    %c0_i32_0 = arith.constant 0 : i32
    %c0_i32_1 = arith.constant 0 : i32
    return %c0_i32, %c0_i32_0 : i32, i32
  }
  func.func @transform_3(%arg0: i32, %arg1: i32) -> (i32, i32) {
    %c0_i32 = arith.constant 0 : i32
    %c0_i32_0 = arith.constant 0 : i32
    %c0_i32_1 = arith.constant 0 : i32
    return %c0_i32, %c0_i32_0 : i32, i32
  }
  func.func @transform_4(%arg0: i32, %arg1: i32) -> (i32, i32) {
    %c0_i32 = arith.constant 0 : i32
    %c0_i32_0 = arith.constant 0 : i32
    %c0_i32_1 = arith.constant 0 : i32
    return %c0_i32, %c0_i32_0 : i32, i32
  }
  func.func @transform_5(%arg0: i32, %arg1: i32) -> (i32, i32, i32) {
    %c0_i32 = arith.constant 0 : i32
    %c0_i32_0 = arith.constant 0 : i32
    return %arg0, %arg1, %c0_i32 : i32, i32, i32
  }
}

</mosaic_0001>

<bundles_post_ra>
// kernel: tpu_custom_call.1
= control target key start
LH: loop header
LB: loop body
LE: loop exit
PB: predicated region body
PF: predicated region fallthrough
CT: control target
= control target key end

     0   :  { %10 = vsyncpa [#allocation3], 0  ;;  %s2649_s0 = inlined_call_operand.hbm [shape: bf16[2,256,128], index: 0, kind: input, shape index: {}]   ;;  %s2650_s1 = inlined_call_operand.vmem [shape: bf16[128,32], index: 1, kind: input, shape index: {}]   ;;  %s2651_s2 = inlined_call_operand.vmem [shape: f32[1,32], index: 2, kind: input, shape index: {}]   ;;  %s2652_s3 = inlined_call_operand.vmem [shape: bf16[32,128], index: 3, kind: input, shape index: {}]   ;;  %s2653_s4 = inlined_call_operand.vmem [shape: f32[1,128], index: 4, kind: input, shape index: {}]   ;;  %s2654_s5 = inlined_call_operand.hbm [shape: bf16[2,256,128], index: 5, kind: output, shape index: {}]  }
   0x1   :  { %12 = vsyncpa [#allocation3 + $0x1], 0 }
   0x2   :  { %13 = vsyncpa [#allocation4], 0 }
   0x3   :  { %15 = vsyncpa [#allocation4 + $0x1], 0  ;;  %s2115_s18 = smov 0   ;;  %s2117_s19 = smov 0  }
   0x4   :  { %s2119_s20 = smov 0   ;;  %s2121_s21 = smov 0  }
   0x5   :  { %s2123_s22 = smov 0   ;;  %s2125_s23 = smov 0  }
   0x6 LB: > { %s1399_s24 = sadd.s32 4294967295, %s2077_s23   ;;  %s1400_s25 = sadd.s32 4294967294, %s2077_s23   ;;  %s2077_s23 = sphi %s2125_s23, %s21_s23   ;;  %s2073_s22 = sphi %s2123_s22, %s2671_s22   ;;  %s2069_s21 = sphi %s2121_s21, %s2670_s21   ;;  %s2065_s20 = sphi %s2119_s20, %s2669_s20   ;;  %s2061_s19 = sphi %s2117_s19, %s2668_s19   ;;  %s2057_s18 = sphi %s2115_s18, %s2667_s18  }
   0x7   : > { %s33_s26 = sadd.s32 1, %s2073_s22  ;;  %s42_s27 = sadd.s32 1, %s2065_s20 }
   0x8   : > { %p35_p0 = scmp.ge.s32.totalorder %s33_s26, 2  ;;  %p49_p1 = scmp.ne.s32.totalorder %s2065_s20, %s2061_s19 }
   0x9   : > { %p50_p2 = scmp.eq.s32.totalorder %s2077_s23, 0  ;;  %p55_p3 = scmp.ne.s32.totalorder %s2061_s19, %s2057_s18 }
   0xa   : > { %s2673_s26 = smov (%p35_p0, %s33_s26), 0  ;;  %p56_p5 = scmp.eq.s32.totalorder %s1399_s24, 0 }
   0xb   : > { %p2156_p4 = por %p50_p2, %p49_p1  ;;  %s37_s29 = ssub.s32 %s2073_s22, %s2673_s26 }
   0xc   : > { %p165_p6 = scmp.eq.s32.totalorder %s1399_s24, 1  ;;  %p40_p7 = scmp.eq.s32.totalorder %s37_s29, 0 }
   0xd   : > { %p2162_p8 = por %p56_p5, %p55_p3  ;;  %p171_p10 = scmp.eq.s32.totalorder %s1400_s25, 1 }
   0xe   : > { %p2166_p9 = por %p165_p6, %p49_p1  ;;  %p1757_p13 = scmp.lt.s32.totalorder %s2077_s23, 2 }
   0xf   : > { %s2171_s7 = scalar_select %p40_p7, %s2065_s20, %s42_s27  }
  0x10   : > { %s2658_s6 = scalar_select %p2166_p9, 1, 0 }
  0x11   : > { %p2173_p11 = por %p171_p10, %p55_p3  ;;  %s203_s9 = sand.u32 1, %s2065_s20  }
  0x12   : > { %s1403_s10 = sshll.u32 %s203_s9, 7  ;;  %s1490_s11 = sshll.u32 %s2073_s22, 11 }
  0x13   : > { %s2659_s8 = scalar_select %p2173_p11, 1, 0 }
  0x14   : > { %s2184_s14 = scalar_lea.hbm %s2649_s0, %s1490_s11  ;;  %s207_s15 = scalar_lea.vmem [#allocation2], %s1403_s10 }
  0x15   : > { %s216_s16 = sshll.u32 %s207_s15, 4  ;;  %p2190_p0 = pnand %p1757_p13, %p2156_p4  ;;  %s2186_s16 = int_to_ptr.vmem [resolvable:$true] %s216_s16 }
  0x16   : > { %s2195_s24 = scalar_lea.sflag [#allocation3], %s203_s9  ;;  %s1965_s25 = scalar_lea.hbm %s2184_s14, 2048 }
  0x17   : > { %p1966_p2 = scmp.ne.s32.totalorder %s2184_s14, %s1965_s25  ;;  %p1967_p3 = pneg %p2190_p0 }
  0x18   : > { %s1970_s28 = scalar_lea.hbm %s2649_s0, 4096  ;;  %p1971_p4 = scmp.lt.u32.totalorder %s2184_s14, %s2649_s0 }
  0x19   : > { %p1968_p5 = pnand %p1967_p3, %p1966_p2  ;;  %p1972_p7 = scmp.lt.u32.totalorder %s1970_s28, %s1965_s25 }
  0x1a   : > { %p1974_p13 = scmp.lt.u32.totalorder %s1965_s25, %s2184_s14 }
  0x1b   : > { %p1969_p6 = pneg %p1968_p5  ;;  %p1973_p10 = por %p1972_p7, %p1971_p4 }
  0x1d   : > { %p1975_p12 = por %p1974_p13, %p1973_p10 }
  0x1f   : > { %p1976_p1 = pnand %p1975_p12, %p1969_p6 }
  0x21   : > { %1979 = shalt.err (!%p1976_p1)
}
  0x22   : > { %s1980_s9 = scalar_lea.vmem %s2186_s16, 2048  ;;  %s2079_s12 = smov [#allocation2]  }
  0x23   : > { %p1981_p2 = scmp.ne.s32.totalorder %s2186_s16, %s1980_s9  ;;  %s1985_s13 = sshll.u32 %s2079_s12, 4  ;;  %s1986_s13 = int_to_ptr.vmem [resolvable:$false] %s1985_s13 }
  0x24   : > { %s1987_s15 = scalar_lea.vmem %s1986_s13, 4096  ;;  %p1988_p9 = scmp.lt.s32.totalorder %s2186_s16, %s1986_s13 }
  0x25   : > { %p1983_p5 = pnand %p1981_p2, %p1967_p3  ;;  %p1989_p4 = scmp.lt.s32.totalorder %s1987_s15, %s1980_s9 }
  0x27   : > { %p1984_p11 = pneg %p1983_p5  ;;  %p1990_p7 = por %p1989_p4, %p1988_p9 }
  0x29   : > { %p1991_p10 = pnand %p1990_p7, %p1984_p11 }
  0x2b   : > { %1994 = shalt.err (!%p1991_p10)
}
  0x2c   : > { %s2080_s25 = smov 64   ;;  %s2081_s27 = smov 4  }
  0x2d   : > { %1752 = dma.hbm_to_vmem [thread:$0]  (!%p2190_p0), %s2184_s14, 2048, %s2186_s16, %s2195_s24, %s2080_s25, %s2080_s25, %s2081_s27  }
  0x2e   : > { %p224_p12 = scmp.lt.s32.totalorder %s2077_s23, 3  ;;  %p2661_p1 = scmp.ge.s32.totalorder %s2077_s23, 1 }
  0x30   : > { %p225_p3 = pnand %p2661_p1, %p224_p12 }
  0x31   : > { %s2227_s29 = sand.u32 (!%p225_p3), 1, %s2061_s19  }
  0x32   : > { %228 = sbr.rel (%p225_p3) target bundleno = 640 (0x280), region = 40  ;;  %s1407_s28 = sshll.u32 (!%p225_p3), %s2227_s29, 7 }
  0x33   : > { %s231_s10 = scalar_lea.sflag (!%p225_p3), [#allocation3], %s2227_s29  ;;  %s2233_s11 = scalar_lea.vmem (!%p225_p3), [#allocation2], %s1407_s28 }
  0x39   : > { %2048 = dma.done.wait (%p2162_p8), %s231_s10, 2048  }
  0x3a   : > { %2050 = vsyncadd (%p2162_p8), %s231_s10, 4294965248  ;;  %v1811_v0 = vld [vmem:[%s2650_s1] sm:$0xff]   ;;  %v1812_v1 = vld [vmem:[%s2650_s1 + $0x8] sm:$0xff]   ;;  %vm695_vm0 = vcmask 261120   ;;  %s2438_s10 = scalar_lea.vmem [#allocation5], %s1407_s28  ;;  %s1523_s28 = sshll.u32 %s2069_s21, 11 }
  0x3b   : > { %1661 = vmatprep.subr.bf16.mxu0 %v1811_v0  ;;  %v1813_v2 = vld [vmem:[%s2650_s1 + $0x10] sm:$0xff]   ;;  %v1814_v3 = vld [vmem:[%s2650_s1 + $0x18] sm:$0xff]   ;;  %v1819_v4 = vld [vmem:[%s2233_s11] sm:$0xff]   ;;  %s1312_s14 = sshll.u32 %s2438_s10, 4  ;;  %s2597_s24 = scalar_lea.hbm %s2654_s5, %s1523_s28  ;;  %s2599_s14 = int_to_ptr.vmem [resolvable:$true] %s1312_s14 }
  0x3c   : > { %1662 = vmatpush3.bf16.msra.mxu0 %v1811_v0  ;;  %1677 = vmatprep.mubr.bf16.mxu0 %v1819_v4  ;;  %v1815_v5 = vld [vmem:[%s2650_s1 + $0x20] sm:$0xff]   ;;  %v1816_v6 = vld [vmem:[%s2650_s1 + $0x28] sm:$0xff]   ;;  %v1817_v7 = vld [vmem:[%s2650_s1 + $0x30] sm:$0xff]   ;;  %s1297_s21 = scalar_lea.sflag [#allocation4], %s2227_s29  ;;  %s1995_s9 = scalar_lea.vmem %s2599_s14, 2048 }
  0x3d   : > { %1663 = vmatprep.subr.bf16.mxu0 %v1812_v1  ;;  %v1818_v8 = vld [vmem:[%s2650_s1 + $0x38] sm:$0xff]   ;;  %v1820_v9 = vld [vmem:[%s2233_s11 + $0x8] sm:$0xff]   ;;  %v1821_v10 = vld [vmem:[%s2233_s11 + $0x10] sm:$0xff]   ;;  %p1996_p8 = scmp.ne.s32.totalorder %s2599_s14, %s1995_s9  ;;  %p2664_p9 = scmp.ne.s32.totalorder %s2658_s6, 0 }
  0x3e   : > { %v1822_v11 = vld [vmem:[%s2233_s11 + $0x18] sm:$0xff]   ;;  %v1823_v12 = vld [vmem:[%s2233_s11 + $0x20] sm:$0xff]   ;;  %v1824_v13 = vld [vmem:[%s2233_s11 + $0x28] sm:$0xff]   ;;  %s2082_s12 = smov [#allocation5]  }
  0x3f   : > { %v1825_v14 = vld [vmem:[%s2233_s11 + $0x30] sm:$0xff]   ;;  %v1826_v15 = vld [vmem:[%s2233_s11 + $0x38] sm:$0xff]   ;;  %v1827_v16 = vld [vmem:[%s2233_s11 + $0x40] sm:$0xff]   ;;  %p1997_p11 = pnand %p1996_p8, %p2664_p9  ;;  %s1999_s13 = sshll.u32 %s2082_s12, 4  ;;  %s2000_s13 = int_to_ptr.vmem [resolvable:$false] %s1999_s13 }
  0x40   : > { %1664 = vmatpush3.bf16.msra.mxu0 %v1812_v1  ;;  %v1828_v17 = vld [vmem:[%s2233_s11 + $0x48] sm:$0xff]   ;;  %v1829_v18 = vld [vmem:[%s2233_s11 + $0x50] sm:$0xff]   ;;  %v1830_v19 = vld [vmem:[%s2233_s11 + $0x58] sm:$0xff]   ;;  %s2001_s30 = scalar_lea.vmem %s2000_s13, 4096  ;;  %p2002_p6 = scmp.lt.s32.totalorder %s2599_s14, %s2000_s13 }
  0x41   : > { %1665 = vmatprep.subr.bf16.mxu0 %v1813_v2  ;;  %v1831_v20 = vld [vmem:[%s2233_s11 + $0x60] sm:$0xff]   ;;  %v1832_v21 = vld [vmem:[%s2233_s11 + $0x68] sm:$0xff]   ;;  %v1833_v22 = vld [vmem:[%s2233_s11 + $0x70] sm:$0xff]   ;;  %p1998_p0 = pneg %p1997_p11  ;;  %p2003_p13 = scmp.lt.s32.totalorder %s2001_s30, %s1995_s9 }
  0x42   : > { %v1834_v23 = vld [vmem:[%s2233_s11 + $0x78] sm:$0xff]   ;;  %v1835_v24 = vld [vmem:[%s2652_s3] sm:$0xff]   ;;  %v1836_v25 = vld [vmem:[%s2652_s3 + $0x8] sm:$0xff]  }
  0x43   : > { %1709 = vmatprep.subr.bf16.mxu1 %v1835_v24  ;;  %v2288_v26 = vld [vmem:[%s2651_s2] ss:$0 sm:$0xff]  ;;  %p2004_p2 = por %p2003_p13, %p2002_p6 }
  0x44   : > { %1666 = vmatpush3.bf16.msra.mxu0 %v1813_v2  ;;  %1710 = vmatpush3.bf16.msra.mxu1 %v1835_v24 }
  0x45   : > { %1667 = vmatprep.subr.bf16.mxu0 %v1814_v3  ;;  %1711 = vmatprep.subr.bf16.mxu1 %v1836_v25  ;;  %p2005_p5 = pnand %p2004_p2, %p1998_p0 }
  0x48   : > { %1668 = vmatpush3.bf16.msra.mxu0 %v1814_v3  ;;  %1712 = vmatpush3.bf16.msra.mxu1 %v1836_v25 }
  0x49   : > { %1669 = vmatprep.subr.bf16.mxu0 %v1815_v5 }
  0x4c   : > { %1670 = vmatpush3.bf16.msra.mxu0 %v1815_v5 }
  0x4d   : > { %1671 = vmatprep.subr.bf16.mxu0 %v1816_v6 }
  0x50   : > { %1672 = vmatpush3.bf16.msra.mxu0 %v1816_v6 }
  0x51   : > { %1673 = vmatprep.subr.bf16.mxu0 %v1817_v7 }
  0x54   : > { %1674 = vmatpush3.bf16.msra.mxu0 %v1817_v7 }
  0x55   : > { %1675 = vmatprep.subr.bf16.mxu0 %v1818_v8 }
  0x58   : > { %1676 = vmatpush3.bf16.msra.mxu0 %v1818_v8 }
  0x5b   : > { %1678 = vmatmul.mubr.bf16.vlgmr.msra.gmra.mrb[0].mxu0 %v1820_v9 }
  0x5c   : > { %1681 = vmatprep.mubr.bf16.mxu0 %v1821_v10 }
  0x63   : > { %1682 = vmatmul.mubr.bf16.gmra.mrb[4].mxu0 %v1822_v11 }
  0x64   : > { %1685 = vmatprep.mubr.bf16.mxu0 %v1823_v12 }
  0x6b   : > { %1686 = vmatmul.mubr.bf16.gmra.mrb[8].mxu0 %v1824_v13 }
  0x6c   : > { %1689 = vmatprep.mubr.bf16.mxu0 %v1825_v14 }
  0x73   : > { %1690 = vmatmul.mubr.bf16.gmra.mrb[12].mxu0 %v1826_v15 }
  0x74   : > { %1693 = vmatprep.mubr.bf16.mxu0 %v1827_v16 }
  0x7b   : > { %1694 = vmatmul.mubr.bf16.gmra.mrb[16].mxu0 %v1828_v17 }
  0x7c   : > { %1697 = vmatprep.mubr.bf16.mxu0 %v1829_v18 }
  0x83   : > { %1698 = vmatmul.mubr.bf16.gmra.mrb[20].mxu0 %v1830_v19 }
  0x84   : > { %1701 = vmatprep.mubr.bf16.mxu0 %v1831_v20 }
  0x8b   : > { %1702 = vmatmul.mubr.bf16.gmra.mrb[24].mxu0 %v1832_v21 }
  0x8c   : > { %1705 = vmatprep.mubr.bf16.mxu0 %v1833_v22 }
  0x93   : > { %1706 = vmatmul.mubr.bf16.gmra.mrb[28].mxu0 %v1834_v23 }
 0x12e   : > { %v1679_v27 = vpop.f32.mrb[0].mxu0 }
 0x12f   : > { %v506_v28 = vadd.f32 %v1679_v27, %v2288_v26  ;;  %v497_v29 = vpop.f32.mrb[1].mxu0 }
 0x130   : > { %v498_v30 = vadd.f32 %v2288_v26, %v497_v29  ;;  %v1680_v31 = vpop.f32.mrb[2].mxu0 }
 0x131   : > { %v509_v32 = vadd.f32 %v1680_v31, %v2288_v26  ;;  %v500_v33 = vpop.f32.mrb[3].mxu0  ;;  %v626_v35 = vmax.f32 %v506_v28, 0.0 }
 0x132   : > { %v501_v34 = vadd.f32 %v2288_v26, %v500_v33  ;;  %v624_v37 = vmax.f32 %v498_v30, 0.0 }
 0x133   : > { %v627_v36 = vmax.f32 %v509_v32, 0.0 }
 0x134   : > { %v625_v38 = vmax.f32 %v501_v34, 0.0 }
 0x135   : > { %v657_v39 = vpack.c.bf16 %v627_v36, %v626_v35 }
 0x136   : > { %v1683_v40 = vpop.f32.mrb[4].mxu0  ;;  %v656_v41 = vpack.c.bf16 %v625_v38, %v624_v37 }
 0x137   : > { %v522_v42 = vadd.f32 %v1683_v40, %v2288_v26  ;;  %v513_v43 = vpop.f32.mrb[5].mxu0 }
 0x138   : > { %v514_v44 = vadd.f32 %v2288_v26, %v513_v43  ;;  %v1684_v45 = vpop.f32.mrb[6].mxu0  ;;  %1713 = vmatprep.mubr.msk.bf16.mxu1 %vm695_vm0, %v656_v41 }
 0x139   : > { %v525_v46 = vadd.f32 %v1684_v45, %v2288_v26  ;;  %v516_v47 = vpop.f32.mrb[7].mxu0  ;;  %1714 = vmatmul.mubr.msk.bf16.vlgmr.msra.gmra.mrb[0].mxu1 %vm695_vm0, %v657_v39  ;;  %v630_v49 = vmax.f32 %v522_v42, 0.0 }
 0x13a   : > { %v517_v48 = vadd.f32 %v2288_v26, %v516_v47  ;;  %v628_v51 = vmax.f32 %v514_v44, 0.0 }
 0x13b   : > { %v631_v50 = vmax.f32 %v525_v46, 0.0 }
 0x13c   : > { %v629_v52 = vmax.f32 %v517_v48, 0.0 }
 0x13d   : > { %v659_v53 = vpack.c.bf16 %v631_v50, %v630_v49 }
 0x13e   : > { %v658_v54 = vpack.c.bf16 %v629_v52, %v628_v51  ;;  %v1687_v55 = vpop.f32.mrb[8].mxu0 }
 0x13f   : > { %v538_v56 = vadd.f32 %v1687_v55, %v2288_v26  ;;  %v529_v57 = vpop.f32.mrb[9].mxu0 }
 0x140   : > { %v530_v58 = vadd.f32 %v2288_v26, %v529_v57  ;;  %v1688_v59 = vpop.f32.mrb[10].mxu0  ;;  %1717 = vmatprep.mubr.msk.bf16.mxu1 %vm695_vm0, %v658_v54 }
 0x141   : > { %v541_v60 = vadd.f32 %v1688_v59, %v2288_v26  ;;  %v532_v61 = vpop.f32.mrb[11].mxu0  ;;  %1718 = vmatmul.mubr.msk.bf16.gmra.mrb[4].mxu1 %vm695_vm0, %v659_v53  ;;  %v634_v63 = vmax.f32 %v538_v56, 0.0 }
 0x142   : > { %v533_v62 = vadd.f32 %v2288_v26, %v532_v61  ;;  %v632_v1 = vmax.f32 %v530_v58, 0.0 }
 0x143   : > { %v635_v0 = vmax.f32 %v541_v60, 0.0 }
 0x144   : > { %v633_v2 = vmax.f32 %v533_v62, 0.0 }
 0x145   : > { %v661_v3 = vpack.c.bf16 %v635_v0, %v634_v63 }
 0x146   : > { %v660_v4 = vpack.c.bf16 %v633_v2, %v632_v1  ;;  %v1691_v5 = vpop.f32.mrb[12].mxu0 }
 0x147   : > { %v554_v6 = vadd.f32 %v1691_v5, %v2288_v26  ;;  %v545_v7 = vpop.f32.mrb[13].mxu0 }
 0x148   : > { %v546_v8 = vadd.f32 %v2288_v26, %v545_v7  ;;  %v1692_v9 = vpop.f32.mrb[14].mxu0  ;;  %1721 = vmatprep.mubr.msk.bf16.mxu1 %vm695_vm0, %v660_v4 }
 0x149   : > { %v557_v10 = vadd.f32 %v1692_v9, %v2288_v26  ;;  %v548_v11 = vpop.f32.mrb[15].mxu0  ;;  %1722 = vmatmul.mubr.msk.bf16.gmra.mrb[8].mxu1 %vm695_vm0, %v661_v3  ;;  %v638_v13 = vmax.f32 %v554_v6, 0.0 }
 0x14a   : > { %v549_v12 = vadd.f32 %v2288_v26, %v548_v11  ;;  %v636_v15 = vmax.f32 %v546_v8, 0.0 }
 0x14b   : > { %v639_v14 = vmax.f32 %v557_v10, 0.0 }
 0x14c   : > { %v637_v16 = vmax.f32 %v549_v12, 0.0  ;;  %v2341_v12 = vld [vmem:[%s2653_s4] ss:$0 sm:$0xff] }
 0x14d   : > { %v663_v17 = vpack.c.bf16 %v639_v14, %v638_v13 }
 0x14e   : > { %v662_v18 = vpack.c.bf16 %v637_v16, %v636_v15  ;;  %v1695_v19 = vpop.f32.mrb[16].mxu0 }
 0x14f   : > { %v570_v20 = vadd.f32 %v1695_v19, %v2288_v26  ;;  %v561_v21 = vpop.f32.mrb[17].mxu0 }
 0x150   : > { %v562_v22 = vadd.f32 %v2288_v26, %v561_v21  ;;  %v1696_v23 = vpop.f32.mrb[18].mxu0  ;;  %1725 = vmatprep.mubr.msk.bf16.mxu1 %vm695_vm0, %v662_v18 }
 0x151   : > { %v573_v24 = vadd.f32 %v1696_v23, %v2288_v26  ;;  %v564_v25 = vpop.f32.mrb[19].mxu0  ;;  %1726 = vmatmul.mubr.msk.bf16.gmra.mrb[12].mxu1 %vm695_vm0, %v663_v17  ;;  %v642_v28 = vmax.f32 %v570_v20, 0.0 }
 0x152   : > { %v565_v27 = vadd.f32 %v2288_v26, %v564_v25  ;;  %v640_v30 = vmax.f32 %v562_v22, 0.0 }
 0x153   : > { %v643_v29 = vmax.f32 %v573_v24, 0.0 }
 0x154   : > { %v641_v31 = vmax.f32 %v565_v27, 0.0 }
 0x155   : > { %v665_v32 = vpack.c.bf16 %v643_v29, %v642_v28 }
 0x156   : > { %v664_v33 = vpack.c.bf16 %v641_v31, %v640_v30  ;;  %v1699_v34 = vpop.f32.mrb[20].mxu0 }
 0x157   : > { %v586_v35 = vadd.f32 %v1699_v34, %v2288_v26  ;;  %v577_v36 = vpop.f32.mrb[21].mxu0 }
 0x158   : > { %v578_v37 = vadd.f32 %v2288_v26, %v577_v36  ;;  %v1700_v38 = vpop.f32.mrb[22].mxu0  ;;  %1729 = vmatprep.mubr.msk.bf16.mxu1 %vm695_vm0, %v664_v33 }
 0x159   : > { %v589_v39 = vadd.f32 %v1700_v38, %v2288_v26  ;;  %v580_v40 = vpop.f32.mrb[23].mxu0  ;;  %1730 = vmatmul.mubr.msk.bf16.gmra.mrb[16].mxu1 %vm695_vm0, %v665_v32  ;;  %v646_v42 = vmax.f32 %v586_v35, 0.0 }
 0x15a   : > { %v581_v41 = vadd.f32 %v2288_v26, %v580_v40  ;;  %v644_v44 = vmax.f32 %v578_v37, 0.0 }
 0x15b   : > { %v647_v43 = vmax.f32 %v589_v39, 0.0 }
 0x15c   : > { %v645_v45 = vmax.f32 %v581_v41, 0.0 }
 0x15d   : > { %v667_v46 = vpack.c.bf16 %v647_v43, %v646_v42 }
 0x15e   : > { %v666_v47 = vpack.c.bf16 %v645_v45, %v644_v44  ;;  %v1703_v48 = vpop.f32.mrb[24].mxu0 }
 0x15f   : > { %v602_v49 = vadd.f32 %v1703_v48, %v2288_v26  ;;  %v593_v50 = vpop.f32.mrb[25].mxu0 }
 0x160   : > { %v594_v51 = vadd.f32 %v2288_v26, %v593_v50  ;;  %v1704_v52 = vpop.f32.mrb[26].mxu0  ;;  %1733 = vmatprep.mubr.msk.bf16.mxu1 %vm695_vm0, %v666_v47 }
 0x161   : > { %v605_v53 = vadd.f32 %v1704_v52, %v2288_v26  ;;  %v596_v54 = vpop.f32.mrb[27].mxu0  ;;  %1734 = vmatmul.mubr.msk.bf16.gmra.mrb[20].mxu1 %vm695_vm0, %v667_v46  ;;  %v650_v56 = vmax.f32 %v602_v49, 0.0  ;;  %v905_v52 = vlaneseq }
 0x162   : > { %v597_v55 = vadd.f32 %v2288_v26, %v596_v54  ;;  %v648_v58 = vmax.f32 %v594_v51, 0.0 }
 0x163   : > { %v651_v57 = vmax.f32 %v605_v53, 0.0 }
 0x164   : > { %v649_v59 = vmax.f32 %v597_v55, 0.0 }
 0x165   : > { %v669_v60 = vpack.c.bf16 %v651_v57, %v650_v56 }
 0x166   : > { %v668_v61 = vpack.c.bf16 %v649_v59, %v648_v58  ;;  %v1707_v62 = vpop.f32.mrb[28].mxu0 }
 0x167   : > { %v618_v63 = vadd.f32 %v1707_v62, %v2288_v26  ;;  %v609_v0 = vpop.f32.mrb[29].mxu0 }
 0x168   : > { %v610_v1 = vadd.f32 %v2288_v26, %v609_v0  ;;  %v1708_v2 = vpop.f32.mrb[30].mxu0  ;;  %1737 = vmatprep.mubr.msk.bf16.mxu1 %vm695_vm0, %v668_v61 }
 0x169   : > { %v621_v3 = vadd.f32 %v1708_v2, %v2288_v26  ;;  %v612_v4 = vpop.f32.mrb[31].mxu0  ;;  %1738 = vmatmul.mubr.msk.bf16.gmra.mrb[24].mxu1 %vm695_vm0, %v669_v60  ;;  %v654_v6 = vmax.f32 %v618_v63, 0.0 }
 0x16a   : > { %v613_v5 = vadd.f32 %v2288_v26, %v612_v4  ;;  %v652_v8 = vmax.f32 %v610_v1, 0.0  ;;  %v906_v4 = vand.u32 127, %v905_v52 }
 0x16b   : > { %v655_v7 = vmax.f32 %v621_v3, 0.0 }
 0x16c   : > { %v653_v9 = vmax.f32 %v613_v5, 0.0  ;;  %vm907_vm1 = vcmp.ge.s32.totalorder %v906_v4, 54  ;;  %vm908_vm2 = vcmp.lt.s32.totalorder %v906_v4, 63 }
 0x16d   : > { %v671_v10 = vpack.c.bf16 %v655_v7, %v654_v6  ;;  %vm2408_vm3 = vmand %vm907_vm1, %vm908_vm2 }
 0x16e   : > { %v670_v11 = vpack.c.bf16 %v653_v9, %v652_v8 }
 0x170   : > { %1741 = vmatprep.mubr.msk.bf16.mxu1 %vm695_vm0, %v670_v11 }
 0x171   : > { %1742 = vmatmul.mubr.msk.bf16.gmra.mrb[28].mxu1 %vm695_vm0, %v671_v10 }
 0x20c   : > { %v1715_v13 = vpop.f32.mrb[0].mxu1 }
 0x20d   : > { %v2344_v14 = vadd.f32 %v1715_v13, %v2341_v12  ;;  %v778_v26 = vpop.f32.mrb[1].mxu1 }
 0x20e   : > { %v2347_v15 = vadd.f32 %v2341_v12, %v778_v26  ;;  %v1716_v16 = vpop.f32.mrb[2].mxu1 }
 0x20f   : > { %v912_v17 = vmax.f32 %v2344_v14, -30.0  ;;  %v2351_v18 = vadd.f32 %v1716_v16, %v2341_v12  ;;  %v781_v19 = vpop.f32.mrb[3].mxu1 }
 0x210   : > { %v910_v20 = vmax.f32 %v2347_v15, -30.0  ;;  %v2355_v21 = vadd.f32 %v2341_v12, %v781_v19 }
 0x211   : > { %v944_v22 = vsub.f32 0.0, %v912_v17  ;;  %v913_v23 = vmax.f32 %v2351_v18, -30.0 }
 0x212   : > { %v942_v24 = vsub.f32 0.0, %v910_v20  ;;  %v911_v25 = vmax.f32 %v2355_v21, -30.0 }
 0x213   : > { %v978_v27 = vmul.f32 1.442695, %v944_v22  ;;  %v945_v28 = vsub.f32 0.0, %v913_v23 }
 0x214   : > { %v974_v29 = vmul.f32 1.442695, %v942_v24  ;;  %v943_v30 = vsub.f32 0.0, %v911_v25  ;;  %v1719_v31 = vpop.f32.mrb[4].mxu1 }
 0x215   : > { %1837 = vpow2.f32 %v978_v27  ;;  %v980_v32 = vmul.f32 1.442695, %v945_v28  ;;  %v2360_v33 = vadd.f32 %v1719_v31, %v2341_v12  ;;  %v794_v34 = vpop.f32.mrb[5].mxu1 }
 0x216   : > { %1839 = vpow2.f32 %v974_v29  ;;  %v976_v35 = vmul.f32 1.442695, %v943_v30  ;;  %v2363_v36 = vadd.f32 %v2341_v12, %v794_v34  ;;  %v1720_v37 = vpop.f32.mrb[6].mxu1 }
 0x217   : > { %1841 = vpow2.f32 %v980_v32  ;;  %v916_v38 = vmax.f32 %v2360_v33, -30.0  ;;  %v2367_v39 = vadd.f32 %v1720_v37, %v2341_v12  ;;  %v797_v40 = vpop.f32.mrb[7].mxu1 }
 0x218   : > { %1843 = vpow2.f32 %v976_v35  ;;  %v914_v41 = vmax.f32 %v2363_v36, -30.0  ;;  %v2371_v42 = vadd.f32 %v2341_v12, %v797_v40 }
 0x219   : > { %v948_v43 = vsub.f32 0.0, %v916_v38  ;;  %v917_v44 = vmax.f32 %v2367_v39, -30.0 }
 0x21a   : > { %v946_v45 = vsub.f32 0.0, %v914_v41  ;;  %v915_v46 = vmax.f32 %v2371_v42, -30.0 }
 0x21b   : > { %v986_v47 = vmul.f32 1.442695, %v948_v43  ;;  %v949_v48 = vsub.f32 0.0, %v917_v44 }
 0x21c   : > { %v982_v49 = vmul.f32 1.442695, %v946_v45  ;;  %v947_v50 = vsub.f32 0.0, %v915_v46  ;;  %v1723_v51 = vpop.f32.mrb[8].mxu1 }
 0x21d   : > { %1845 = vpow2.f32 %v986_v47  ;;  %v988_v53 = vmul.f32 1.442695, %v949_v48  ;;  %v2376_v54 = vadd.f32 %v1723_v51, %v2341_v12  ;;  %v810_v55 = vpop.f32.mrb[9].mxu1 }
 0x21e   : > { %1847 = vpow2.f32 %v982_v49  ;;  %v984_v56 = vmul.f32 1.442695, %v947_v50  ;;  %v2379_v57 = vadd.f32 %v2341_v12, %v810_v55  ;;  %v1724_v58 = vpop.f32.mrb[10].mxu1 }
 0x21f   : > { %v1838_v59 = vpop.eup %1837  ;;  %1849 = vpow2.f32 %v988_v53  ;;  %v920_v60 = vmax.f32 %v2376_v54, -30.0  ;;  %v2383_v61 = vadd.f32 %v1724_v58, %v2341_v12  ;;  %v813_v62 = vpop.f32.mrb[11].mxu1 }
 0x220   : > { %v1840_v63 = vpop.eup %1839  ;;  %v1040_v0 = vadd.f32 1.0, %v1838_v59  ;;  %1851 = vpow2.f32 %v984_v56  ;;  %v918_v1 = vmax.f32 %v2379_v57, -30.0  ;;  %v2387_v2 = vadd.f32 %v2341_v12, %v813_v62 }
 0x221   : > { %v1842_v3 = vpop.eup %1841  ;;  %v1038_v5 = vadd.f32 1.0, %v1840_v63  ;;  %v952_v6 = vsub.f32 0.0, %v920_v60  ;;  %v921_v7 = vmax.f32 %v2383_v61, -30.0 }
 0x222   : > { %v1844_v8 = vpop.eup %1843  ;;  %1853 = vrcp.f32 %v1040_v0  ;;  %v1041_v9 = vadd.f32 1.0, %v1842_v3  ;;  %v950_v10 = vsub.f32 0.0, %v918_v1  ;;  %v919_v11 = vmax.f32 %v2387_v2, -30.0 }
 0x223   : > { %1855 = vrcp.f32 %v1038_v5  ;;  %v1039_v13 = vadd.f32 1.0, %v1844_v8  ;;  %v994_v26 = vmul.f32 1.442695, %v952_v6  ;;  %v953_v16 = vsub.f32 0.0, %v921_v7 }
 0x224   : > { %1857 = vrcp.f32 %v1041_v9  ;;  %v990_v17 = vmul.f32 1.442695, %v950_v10  ;;  %v951_v19 = vsub.f32 0.0, %v919_v11  ;;  %v1727_v20 = vpop.f32.mrb[12].mxu1 }
 0x225   : > { %1859 = vrcp.f32 %v1039_v13  ;;  %v996_v22 = vmul.f32 1.442695, %v953_v16  ;;  %v2392_v23 = vadd.f32 %v1727_v20, %v2341_v12  ;;  %v826_v24 = vpop.f32.mrb[13].mxu1 }
 0x226   : > { %1861 = vpow2.f32 %v994_v26  ;;  %v992_v25 = vmul.f32 1.442695, %v951_v19  ;;  %v2395_v27 = vadd.f32 %v2341_v12, %v826_v24  ;;  %v1728_v28 = vpop.f32.mrb[14].mxu1 }
 0x227   : > { %v1846_v29 = vpop.eup %1845  ;;  %1863 = vpow2.f32 %v990_v17  ;;  %v924_v30 = vmax.f32 %v2392_v23, -30.0  ;;  %v2399_v31 = vadd.f32 %v1728_v28, %v2341_v12  ;;  %v829_v32 = vpop.f32.mrb[15].mxu1 }
 0x228   : > { %v1848_v34 = vpop.eup %1847  ;;  %v1044_v35 = vadd.f32 1.0, %v1846_v29  ;;  %1865 = vpow2.f32 %v996_v22  ;;  %v922_v37 = vmax.f32 %v2395_v27, -30.0  ;;  %v2403_v38 = vadd.f32 %v2341_v12, %v829_v32 }
 0x229   : > { %v1850_v40 = vpop.eup %1849  ;;  %v1042_v41 = vadd.f32 1.0, %v1848_v34  ;;  %1867 = vpow2.f32 %v992_v25  ;;  %v956_v43 = vsub.f32 0.0, %v924_v30  ;;  %v925_v44 = vmax.f32 %v2399_v31, -30.0 }
 0x22a   : > { %v1852_v45 = vpop.eup %1851  ;;  %1869 = vrcp.f32 %v1044_v35  ;;  %v1045_v47 = vadd.f32 1.0, %v1850_v40  ;;  %v954_v48 = vsub.f32 0.0, %v922_v37  ;;  %v923_v49 = vmax.f32 %v2403_v38, -30.0 }
 0x22b   : > { %1871 = vrcp.f32 %v1042_v41  ;;  %v1043_v50 = vadd.f32 1.0, %v1852_v45  ;;  %v1002_v51 = vmul.f32 1.442695, %v956_v43  ;;  %v957_v52 = vsub.f32 0.0, %v925_v44 }
 0x22c   : > { %v1854_v53 = vpop.eup %1853  ;;  %1873 = vrcp.f32 %v1045_v47  ;;  %v998_v55 = vmul.f32 1.442695, %v954_v48  ;;  %v955_v56 = vsub.f32 0.0, %v923_v49  ;;  %v1731_v58 = vpop.f32.mrb[16].mxu1 }
 0x22d   : > { %v1856_v59 = vpop.eup %1855  ;;  %v1106_v60 = vsel %vm2408_vm3, %v1854_v53, %v2344_v14  ;;  %1875 = vrcp.f32 %v1043_v50  ;;  %v1004_v62 = vmul.f32 1.442695, %v957_v52  ;;  %v2417_v63 = vadd.f32 %v1731_v58, %v2341_v12  ;;  %v842_v0 = vpop.f32.mrb[17].mxu1 }
 0x22e   : > { %v1858_v1 = vpop.eup %1857  ;;  %v1104_v3 = vsel %vm2408_vm3, %v1856_v59, %v2347_v15  ;;  %1877 = vpow2.f32 %v1002_v51  ;;  %v1000_v4 = vmul.f32 1.442695, %v955_v56  ;;  %v2423_v5 = vadd.f32 %v2341_v12, %v842_v0  ;;  %v1732_v6 = vpop.f32.mrb[18].mxu1 }
 0x22f   : > { %v1860_v7 = vpop.eup %1859  ;;  %v1107_v14 = vsel %vm2408_vm3, %v1858_v1, %v2351_v18  ;;  %1879 = vpow2.f32 %v998_v55  ;;  %v928_v8 = vmax.f32 %v2417_v63, -30.0  ;;  %v2430_v9 = vadd.f32 %v1732_v6, %v2341_v12  ;;  %v845_v10 = vpop.f32.mrb[19].mxu1 }
 0x230   : > { %v1862_v15 = vpop.eup %1861  ;;  %v1532_v11 = vpack.c.bf16 %v1107_v14, %v1106_v60  ;;  %v1105_v13 = vsel %vm2408_vm3, %v1860_v7, %v2355_v21  ;;  %1881 = vpow2.f32 %v1004_v62  ;;  %v926_v26 = vmax.f32 %v2423_v5, -30.0 }
 0x231   : > { %v1864_v16 = vpop.eup %1863  ;;  %v1527_v17 = vpack.c.bf16 %v1105_v13, %v1104_v3  ;;  %v1048_v18 = vadd.f32 1.0, %v1862_v15  ;;  %1883 = vpow2.f32 %v1000_v4  ;;  %v960_v19 = vsub.f32 0.0, %v928_v8 }
 0x232   : > { %v1866_v20 = vpop.eup %1865  ;;  %1604 = vst [vmem:[%s2438_s10 + $0x8] sm:$0xff] %v1532_v11   ;;  %v1046_v22 = vadd.f32 1.0, %v1864_v16  ;;  %v958_v24 = vsub.f32 0.0, %v926_v26  ;;  %v929_v25 = vmax.f32 %v2430_v9, -30.0  ;;  %v2443_v21 = vadd.f32 %v2341_v12, %v845_v10 }
 0x233   : > { %v1868_v28 = vpop.eup %1867  ;;  %1528 = vst [vmem:[%s2438_s10] sm:$0xff] %v1527_v17   ;;  %1885 = vrcp.f32 %v1048_v18  ;;  %v1049_v29 = vadd.f32 1.0, %v1866_v20  ;;  %v1010_v30 = vmul.f32 1.442695, %v960_v19 }
 0x234   : > { %v1870_v32 = vpop.eup %1869  ;;  %1887 = vrcp.f32 %v1046_v22  ;;  %v1047_v34 = vadd.f32 1.0, %v1868_v28  ;;  %v1006_v35 = vmul.f32 1.442695, %v958_v24  ;;  %v961_v37 = vsub.f32 0.0, %v929_v25  ;;  %v1735_v40 = vpop.f32.mrb[20].mxu1 }
 0x235   : > { %v1872_v41 = vpop.eup %1871  ;;  %v1110_v43 = vsel %vm2408_vm3, %v1870_v32, %v2360_v33  ;;  %1889 = vrcp.f32 %v1049_v29  ;;  %v927_v44 = vmax.f32 %v2443_v21, -30.0  ;;  %v2451_v45 = vadd.f32 %v1735_v40, %v2341_v12  ;;  %v858_v47 = vpop.f32.mrb[21].mxu1 }
 0x236   : > { %v1874_v48 = vpop.eup %1873  ;;  %v1108_v49 = vsel %vm2408_vm3, %v1872_v41, %v2363_v36  ;;  %1891 = vrcp.f32 %v1047_v34  ;;  %v1012_v50 = vmul.f32 1.442695, %v961_v37  ;;  %v2457_v51 = vadd.f32 %v2341_v12, %v858_v47  ;;  %v1736_v52 = vpop.f32.mrb[22].mxu1 }
 0x237   : > { %v1876_v53 = vpop.eup %1875  ;;  %v1111_v33 = vsel %vm2408_vm3, %v1874_v48, %v2367_v39  ;;  %1893 = vpow2.f32 %v1010_v30  ;;  %v959_v55 = vsub.f32 0.0, %v927_v44  ;;  %v932_v56 = vmax.f32 %v2451_v45, -30.0  ;;  %v861_v58 = vpop.f32.mrb[23].mxu1 }
 0x238   : > { %v1878_v59 = vpop.eup %1877  ;;  %v1542_v36 = vpack.c.bf16 %v1111_v33, %v1110_v43  ;;  %v1109_v60 = vsel %vm2408_vm3, %v1876_v53, %v2371_v42  ;;  %1895 = vpow2.f32 %v1006_v35  ;;  %v930_v62 = vmax.f32 %v2457_v51, -30.0 }
 0x239   : > { %v1880_v0 = vpop.eup %1879  ;;  %v1537_v1 = vpack.c.bf16 %v1109_v60, %v1108_v49  ;;  %v1052_v3 = vadd.f32 1.0, %v1878_v59  ;;  %1897 = vpow2.f32 %v1012_v50  ;;  %v964_v6 = vsub.f32 0.0, %v932_v56 }
 0x23a   : > { %v1882_v39 = vpop.eup %1881  ;;  %1606 = vst [vmem:[%s2438_s10 + $0x18] sm:$0xff] %v1542_v36   ;;  %v1050_v4 = vadd.f32 1.0, %v1880_v0  ;;  %v962_v7 = vsub.f32 0.0, %v930_v62  ;;  %v2469_v14 = vadd.f32 %v1736_v52, %v2341_v12  ;;  %v1008_v42 = vmul.f32 1.442695, %v959_v55 }
 0x23b   : > { %v1884_v8 = vpop.eup %1883  ;;  %1605 = vst [vmem:[%s2438_s10 + $0x10] sm:$0xff] %v1537_v1   ;;  %1899 = vrcp.f32 %v1052_v3  ;;  %v1053_v10 = vadd.f32 1.0, %v1882_v39  ;;  %v2473_v15 = vadd.f32 %v2341_v12, %v861_v58  ;;  %v1018_v13 = vmul.f32 1.442695, %v964_v6 }
 0x23c   : > { %1901 = vrcp.f32 %v1050_v4  ;;  %v1051_v11 = vadd.f32 1.0, %v1884_v8  ;;  %v1014_v26 = vmul.f32 1.442695, %v962_v7  ;;  %v1739_v16 = vpop.f32.mrb[24].mxu1  ;;  %v933_v18 = vmax.f32 %v2469_v14, -30.0 }
 0x23d   : > { %v1886_v17 = vpop.eup %1885  ;;  %1903 = vrcp.f32 %v1053_v10  ;;  %v931_v19 = vmax.f32 %v2473_v15, -30.0  ;;  %v2478_v20 = vadd.f32 %v1739_v16, %v2341_v12  ;;  %v874_v22 = vpop.f32.mrb[25].mxu1 }
 0x23e   : > { %v1888_v24 = vpop.eup %1887  ;;  %v1114_v25 = vsel %vm2408_vm3, %v1886_v17, %v2376_v54  ;;  %1905 = vrcp.f32 %v1051_v11  ;;  %v2484_v28 = vadd.f32 %v2341_v12, %v874_v22  ;;  %v1740_v29 = vpop.f32.mrb[26].mxu1  ;;  %v965_v34 = vsub.f32 0.0, %v933_v18 }
 0x23f   : > { %v1890_v30 = vpop.eup %1889  ;;  %v1112_v32 = vsel %vm2408_vm3, %v1888_v24, %v2379_v57  ;;  %1907 = vpow2.f32 %v1008_v42  ;;  %v963_v35 = vsub.f32 0.0, %v931_v19  ;;  %v877_v37 = vpop.f32.mrb[27].mxu1  ;;  %v936_v41 = vmax.f32 %v2478_v20, -30.0 }
 0x240   : > { %v1892_v40 = vpop.eup %1891  ;;  %v1115_v54 = vsel %vm2408_vm3, %v1890_v30, %v2383_v61  ;;  %1909 = vpow2.f32 %v1018_v13  ;;  %v934_v43 = vmax.f32 %v2484_v28, -30.0  ;;  %v1020_v48 = vmul.f32 1.442695, %v965_v34 }
 0x241   : > { %v1894_v44 = vpop.eup %1893  ;;  %v1552_v47 = vpack.c.bf16 %v1115_v54, %v1114_v25  ;;  %v1113_v57 = vsel %vm2408_vm3, %v1892_v40, %v2387_v2  ;;  %1911 = vpow2.f32 %v1014_v26  ;;  %v1016_v53 = vmul.f32 1.442695, %v963_v35 }
 0x242   : > { %v1896_v49 = vpop.eup %1895  ;;  %v1547_v50 = vpack.c.bf16 %v1113_v57, %v1112_v32  ;;  %v1056_v52 = vadd.f32 1.0, %v1894_v44  ;;  %v968_v33 = vsub.f32 0.0, %v936_v41  ;;  %1913 = vpow2.f32 %v1020_v48 }
 0x243   : > { %v1898_v61 = vpop.eup %1897  ;;  %1608 = vst [vmem:[%s2438_s10 + $0x28] sm:$0xff] %v1552_v47   ;;  %v1054_v55 = vadd.f32 1.0, %v1896_v49  ;;  %v966_v56 = vsub.f32 0.0, %v934_v43  ;;  %v2499_v58 = vadd.f32 %v1740_v29, %v2341_v12  ;;  %v2503_v2 = vadd.f32 %v2341_v12, %v877_v37 }
 0x244   : > { %1607 = vst [vmem:[%s2438_s10 + $0x20] sm:$0xff] %v1547_v50   ;;  %1915 = vrcp.f32 %v1056_v52  ;;  %v1057_v59 = vadd.f32 1.0, %v1898_v61  ;;  %v1026_v36 = vmul.f32 1.442695, %v968_v33  ;;  %v1743_v60 = vpop.f32.mrb[28].mxu1 }
 0x245   : > { %v1900_v62 = vpop.eup %1899  ;;  %1917 = vrcp.f32 %v1054_v55  ;;  %v1022_v0 = vmul.f32 1.442695, %v966_v56  ;;  %v937_v1 = vmax.f32 %v2499_v58, -30.0  ;;  %v2507_v3 = vadd.f32 %v1743_v60, %v2341_v12  ;;  %v890_v39 = vpop.f32.mrb[29].mxu1 }
 0x246   : > { %v1902_v4 = vpop.eup %1901  ;;  %v1118_v6 = vsel %vm2408_vm3, %v1900_v62, %v2392_v23  ;;  %1919 = vrcp.f32 %v1057_v59  ;;  %v935_v7 = vmax.f32 %v2503_v2, -30.0  ;;  %v2514_v8 = vadd.f32 %v2341_v12, %v890_v39  ;;  %v1744_v10 = vpop.f32.mrb[30].mxu1 }
 0x247   : > { %v1904_v42 = vpop.eup %1903  ;;  %v1116_v11 = vsel %vm2408_vm3, %v1902_v4, %v2395_v27  ;;  %1921 = vpow2.f32 %v1016_v53  ;;  %v969_v13 = vsub.f32 0.0, %v937_v1  ;;  %v940_v26 = vmax.f32 %v2507_v3, -30.0  ;;  %v893_v16 = vpop.f32.mrb[31].mxu1 }
 0x248   : > { %v1906_v17 = vpop.eup %1905  ;;  %v1119_v23 = vsel %vm2408_vm3, %v1904_v42, %v2399_v31  ;;  %1923 = vpow2.f32 %v1026_v36  ;;  %v967_v18 = vsub.f32 0.0, %v935_v7  ;;  %v938_v19 = vmax.f32 %v2514_v8, -30.0 }
 0x249   : > { %v1908_v22 = vpop.eup %1907  ;;  %v1562_v24 = vpack.c.bf16 %v1119_v23, %v1118_v6  ;;  %v1117_v27 = vsel %vm2408_vm3, %v1906_v17, %v2403_v38  ;;  %1925 = vpow2.f32 %v1022_v0  ;;  %v1028_v25 = vmul.f32 1.442695, %v969_v13 }
 0x24a   : > { %v1910_v29 = vpop.eup %1909  ;;  %v1557_v30 = vpack.c.bf16 %v1117_v27, %v1116_v11  ;;  %v1055_v32 = vadd.f32 1.0, %v1908_v22  ;;  %v1024_v34 = vmul.f32 1.442695, %v967_v18  ;;  %v972_v35 = vsub.f32 0.0, %v940_v26 }
 0x24b   : > { %v1912_v37 = vpop.eup %1911  ;;  %1610 = vst [vmem:[%s2438_s10 + $0x38] sm:$0xff] %v1562_v24   ;;  %v1060_v31 = vadd.f32 1.0, %v1910_v29  ;;  %1927 = vpow2.f32 %v1028_v25  ;;  %v970_v40 = vsub.f32 0.0, %v938_v19  ;;  %v2529_v54 = vadd.f32 %v1744_v10, %v2341_v12 }
 0x24c   : > { %1609 = vst [vmem:[%s2438_s10 + $0x30] sm:$0xff] %v1557_v30   ;;  %1929 = vrcp.f32 %v1055_v32  ;;  %v1058_v41 = vadd.f32 1.0, %v1912_v37  ;;  %v2533_v38 = vadd.f32 %v2341_v12, %v893_v16  ;;  %v1914_v43 = vpop.eup %1913  ;;  %v1034_v44 = vmul.f32 1.442695, %v972_v35 }
 0x24d   : > { %1931 = vrcp.f32 %v1060_v31  ;;  %v941_v47 = vmax.f32 %v2529_v54, -30.0  ;;  %v1061_v48 = vadd.f32 1.0, %v1914_v43  ;;  %v1030_v49 = vmul.f32 1.442695, %v970_v40 }
 0x24e   : > { %v1916_v57 = vpop.eup %1915  ;;  %1933 = vrcp.f32 %v1058_v41  ;;  %v939_v50 = vmax.f32 %v2533_v38, -30.0 }
 0x24f   : > { %v1918_v52 = vpop.eup %1917  ;;  %1935 = vpow2.f32 %v1024_v34  ;;  %v973_v53 = vsub.f32 0.0, %v941_v47  ;;  %v1122_v55 = vsel %vm2408_vm3, %v1916_v57, %v2417_v63 }
 0x250   : > { %v1920_v33 = vpop.eup %1919  ;;  %1937 = vrcp.f32 %v1061_v48  ;;  %v971_v61 = vsub.f32 0.0, %v939_v50 }
 0x251   : > { %v1922_v12 = vpop.eup %1921  ;;  %v1123_v56 = vsel %vm2408_vm3, %v1920_v33, %v2430_v9  ;;  %1939 = vpow2.f32 %v1034_v44  ;;  %v1036_v59 = vmul.f32 1.442695, %v973_v53  ;;  %v1120_v9 = vsel %vm2408_vm3, %v1918_v52, %v2423_v5 }
 0x252   : > { %v1924_v36 = vpop.eup %1923  ;;  %v1572_v60 = vpack.c.bf16 %v1123_v56, %v1122_v55  ;;  %v1059_v62 = vadd.f32 1.0, %v1922_v12  ;;  %1941 = vpow2.f32 %v1030_v49  ;;  %v1032_v39 = vmul.f32 1.442695, %v971_v61 }
 0x253   : > { %v1926_v0 = vpop.eup %1925  ;;  %v1064_v1 = vadd.f32 1.0, %v1924_v36  ;;  %1943 = vpow2.f32 %v1036_v59 }
 0x254   : > { %1612 = vst [vmem:[%s2438_s10 + $0x48] sm:$0xff] %v1572_v60   ;;  %1945 = vrcp.f32 %v1059_v62  ;;  %v1062_v63 = vadd.f32 1.0, %v1926_v0 }
 0x255   : > { %v1928_v4 = vpop.eup %1927  ;;  %1947 = vrcp.f32 %v1064_v1 }
 0x256   : > { %v1930_v6 = vpop.eup %1929  ;;  %v1065_v7 = vadd.f32 1.0, %v1928_v4  ;;  %1949 = vpow2.f32 %v1032_v39 }
 0x257   : > { %v1932_v10 = vpop.eup %1931  ;;  %v1121_v42 = vsel %vm2408_vm3, %v1930_v6, %v2443_v21 }
 0x258   : > { %v1934_v11 = vpop.eup %1933  ;;  %v1567_v13 = vpack.c.bf16 %v1121_v42, %v1120_v9  ;;  %1951 = vrcp.f32 %v1065_v7  ;;  %v1126_v18 = vsel %vm2408_vm3, %v1932_v10, %v2451_v45 }
 0x259   : > { %v1936_v26 = vpop.eup %1935  ;;  %1953 = vrcp.f32 %v1062_v63  ;;  %v1124_v30 = vsel %vm2408_vm3, %v1934_v11, %v2457_v51 }
 0x25a   : > { %v1938_v16 = vpop.eup %1937  ;;  %1611 = vst [vmem:[%s2438_s10 + $0x40] sm:$0xff] %v1567_v13   ;;  %v1063_v17 = vadd.f32 1.0, %v1936_v26 }
 0x25b   : > { %v1940_v23 = vpop.eup %1939  ;;  %v1127_v5 = vsel %vm2408_vm3, %v1938_v16, %v2469_v14 }
 0x25c   : > { %v1942_v21 = vpop.eup %1941  ;;  %v1582_v19 = vpack.c.bf16 %v1127_v5, %v1126_v18  ;;  %1955 = vrcp.f32 %v1063_v17  ;;  %v1068_v22 = vadd.f32 1.0, %v1940_v23 }
 0x25d   : > { %v1944_v24 = vpop.eup %1943  ;;  %v1066_v27 = vadd.f32 1.0, %v1942_v21 }
 0x25e   : > { %v1946_v25 = vpop.eup %1945  ;;  %1614 = vst [vmem:[%s2438_s10 + $0x58] sm:$0xff] %v1582_v19   ;;  %1957 = vrcp.f32 %v1068_v22  ;;  %v1069_v29 = vadd.f32 1.0, %v1944_v24 }
 0x25f   : > { %v1125_v45 = vsel %vm2408_vm3, %v1946_v25, %v2473_v15  ;;  %1959 = vrcp.f32 %v1066_v27  ;;  %v1948_v14 = vpop.eup %1947 }
 0x260   : > { %v1577_v32 = vpack.c.bf16 %v1125_v45, %v1124_v30  ;;  %1961 = vrcp.f32 %v1069_v29  ;;  %v1950_v34 = vpop.eup %1949  ;;  %v1130_v31 = vsel %vm2408_vm3, %v1948_v14, %v2478_v20 }
 0x261   : > { %v1067_v37 = vadd.f32 1.0, %v1950_v34 }
 0x262   : > { %v1952_v35 = vpop.eup %1951  ;;  %1613 = vst [vmem:[%s2438_s10 + $0x50] sm:$0xff] %v1577_v32  }
 0x263   : > { %v1131_v51 = vsel %vm2408_vm3, %v1952_v35, %v2499_v58  ;;  %v1954_v40 = vpop.eup %1953  ;;  %1963 = vrcp.f32 %v1067_v37 }
 0x264   : > { %v1592_v15 = vpack.c.bf16 %v1131_v51, %v1130_v31  ;;  %v1128_v43 = vsel %vm2408_vm3, %v1954_v40, %v2484_v28 }
 0x266   : > { %v1956_v41 = vpop.eup %1955  ;;  %1616 = vst [vmem:[%s2438_s10 + $0x68] sm:$0xff] %v1592_v15  }
 0x267   : > { %v1129_v20 = vsel %vm2408_vm3, %v1956_v41, %v2503_v2 }
 0x268   : > { %v1958_v44 = vpop.eup %1957  ;;  %v1587_v47 = vpack.c.bf16 %v1129_v20, %v1128_v43 }
 0x269   : > { %v1960_v58 = vpop.eup %1959  ;;  %v1134_v28 = vsel %vm2408_vm3, %v1958_v44, %v2507_v3 }
 0x26a   : > { %v1962_v57 = vpop.eup %1961  ;;  %1615 = vst [vmem:[%s2438_s10 + $0x60] sm:$0xff] %v1587_v47   ;;  %v1132_v48 = vsel %vm2408_vm3, %v1960_v58, %v2514_v8 }
 0x26b   : > { %v1135_v2 = vsel %vm2408_vm3, %v1962_v57, %v2529_v54 }
 0x26c   : > { %v1602_v49 = vpack.c.bf16 %v1135_v2, %v1134_v28 }
 0x26d   : > { %v1964_v50 = vpop.eup %1963 }
 0x26e   : > { %1618 = vst [vmem:[%s2438_s10 + $0x78] sm:$0xff] %v1602_v49   ;;  %v1133_v52 = vsel %vm2408_vm3, %v1964_v50, %v2533_v38 }
 0x26f   : > { %v1597_v3 = vpack.c.bf16 %v1133_v52, %v1132_v48 }
 0x271   : > { %1617 = vst [vmem:[%s2438_s10 + $0x70] sm:$0xff] %v1597_v3  }
 0x272   : > { %2008 = shalt.err (!%p2005_p5)
}
 0x273   : > { %s2009_s15 = scalar_lea.hbm %s2597_s24, 2048  ;;  %s2013_s27 = scalar_lea.hbm %s2654_s5, 4096 }
 0x274   : > { %p2010_p4 = scmp.ne.s32.totalorder %s2597_s24, %s2009_s15  ;;  %p2014_p12 = scmp.lt.u32.totalorder %s2597_s24, %s2654_s5 }
 0x275   : > { %p2015_p1 = scmp.lt.u32.totalorder %s2013_s27, %s2009_s15  ;;  %p2017_p8 = scmp.lt.u32.totalorder %s2009_s15, %s2597_s24 }
 0x276   : > { %p2011_p7 = pnand %p2010_p4, %p2664_p9 }
 0x277   : > { %p2016_p3 = por %p2015_p1, %p2014_p12 }
 0x278   : > { %p2012_p10 = pneg %p2011_p7 }
 0x279   : > { %p2018_p11 = por %p2017_p8, %p2016_p3 }
 0x27b   : > { %p2019_p0 = pnand %p2018_p11, %p2012_p10 }
 0x27d   : > { %2022 = shalt.err (!%p2019_p0)
}
 0x27e   : > { %s2083_s16 = smov 64   ;;  %s2084_s17 = smov 4  }
 0x27f   : > { %1747 = dma.vmem_to_hbm [thread:$0]  (%p2664_p9), %s2599_s14, 2048, %s2597_s24, %s1297_s21, %s2083_s16, %s2083_s16, %s2084_s17  }
 0x280 PF: > { %s1327_s9 = sand.u32 1, %s2057_s18   ;;  %p2665_p6 = scmp.ne.s32.totalorder %s2659_s8, 0 }
 0x281   : > { %p2666_p13 = scmp.ge.s32.totalorder %s2077_s23, 2  ;;  %s1328_s12 = scalar_lea.sflag [#allocation4], %s1327_s9 }
 0x283   : > { %p1754_p2 = pnand %p2666_p13, %p2665_p6 }
 0x285   : > { %2052 = dma.done.wait (!%p1754_p2), %s1328_s12, 2048  }
 0x286   : > { %2054 = vsyncadd (!%p1754_p2), %s1328_s12, 4294965248  ;;  %s21_s23 = sadd.s32 1, %s2077_s23   ;;  %s2667_s18 = smov %s2061_s19 }
 0x287   : > { %p18_p5 = scmp.ge.s32.totalorder %s21_s23, 4   ;;  %s2668_s19 = smov %s2065_s20 }
 0x288   : > { %s2669_s20 = smov %s2171_s7  ;;  %s2670_s21 = smov %s2073_s22 }
 0x289   : > { %s2671_s22 = smov %s2673_s26  ;;  %20 = sbr.rel (!%p18_p5) target bundleno = 6 (0x6), region = 85 }
 0x290   :  { %1333 = vsyncpa [#allocation3], 1 }
 0x291   :  { %1335 = vsyncpa [#allocation3 + $0x1], 1 }
 0x292   :  { %1336 = vsyncpa [#allocation4], 1 }
 0x293   :  { %1338 = vsyncpa [#allocation4 + $0x1], 1 }

// kernel: tpu_custom_call.1
= control target key start
LH: loop header
LB: loop body
LE: loop exit
PB: predicated region body
PF: predicated region fallthrough
CT: control target
= control target key end

     0   :  { %10 = vsyncpa [#allocation3], 0  ;;  %s2649_s0 = inlined_call_operand.hbm [shape: bf16[2,256,128], index: 0, kind: input, shape index: {}]   ;;  %s2650_s1 = inlined_call_operand.vmem [shape: bf16[128,32], index: 1, kind: input, shape index: {}]   ;;  %s2651_s2 = inlined_call_operand.vmem [shape: f32[1,32], index: 2, kind: input, shape index: {}]   ;;  %s2652_s3 = inlined_call_operand.vmem [shape: bf16[32,128], index: 3, kind: input, shape index: {}]   ;;  %s2653_s4 = inlined_call_operand.vmem [shape: f32[1,128], index: 4, kind: input, shape index: {}]   ;;  %s2654_s5 = inlined_call_operand.hbm [shape: bf16[2,256,128], index: 5, kind: output, shape index: {}]  }
   0x1   :  { %12 = vsyncpa [#allocation3 + $0x1], 0 }
   0x2   :  { %13 = vsyncpa [#allocation4], 0 }
   0x3   :  { %15 = vsyncpa [#allocation4 + $0x1], 0  ;;  %s2115_s18 = smov 0   ;;  %s2117_s19 = smov 0  }
   0x4   :  { %s2119_s20 = smov 0   ;;  %s2121_s21 = smov 0  }
   0x5   :  { %s2123_s22 = smov 0   ;;  %s2125_s23 = smov 0  }
   0x6 LB: > { %s1399_s24 = sadd.s32 4294967295, %s2077_s23   ;;  %s1400_s25 = sadd.s32 4294967294, %s2077_s23   ;;  %s2077_s23 = sphi %s2125_s23, %s21_s23   ;;  %s2073_s22 = sphi %s2123_s22, %s2671_s22   ;;  %s2069_s21 = sphi %s2121_s21, %s2670_s21   ;;  %s2065_s20 = sphi %s2119_s20, %s2669_s20   ;;  %s2061_s19 = sphi %s2117_s19, %s2668_s19   ;;  %s2057_s18 = sphi %s2115_s18, %s2667_s18  }
   0x7   : > { %s33_s26 = sadd.s32 1, %s2073_s22  ;;  %s42_s27 = sadd.s32 1, %s2065_s20 }
   0x8   : > { %p35_p0 = scmp.ge.s32.totalorder %s33_s26, 2  ;;  %p49_p1 = scmp.ne.s32.totalorder %s2065_s20, %s2061_s19 }
   0x9   : > { %p50_p2 = scmp.eq.s32.totalorder %s2077_s23, 0  ;;  %p55_p3 = scmp.ne.s32.totalorder %s2061_s19, %s2057_s18 }
   0xa   : > { %s2673_s26 = smov (%p35_p0, %s33_s26), 0  ;;  %p56_p5 = scmp.eq.s32.totalorder %s1399_s24, 0 }
   0xb   : > { %p2156_p4 = por %p50_p2, %p49_p1  ;;  %s37_s29 = ssub.s32 %s2073_s22, %s2673_s26 }
   0xc   : > { %p165_p6 = scmp.eq.s32.totalorder %s1399_s24, 1  ;;  %p40_p7 = scmp.eq.s32.totalorder %s37_s29, 0 }
   0xd   : > { %p2162_p8 = por %p56_p5, %p55_p3  ;;  %p171_p10 = scmp.eq.s32.totalorder %s1400_s25, 1 }
   0xe   : > { %p2166_p9 = por %p165_p6, %p49_p1  ;;  %p1757_p13 = scmp.lt.s32.totalorder %s2077_s23, 2 }
   0xf   : > { %s2171_s7 = scalar_select %p40_p7, %s2065_s20, %s42_s27  }
  0x10   : > { %s2658_s6 = scalar_select %p2166_p9, 1, 0 }
  0x11   : > { %p2173_p11 = por %p171_p10, %p55_p3  ;;  %s203_s9 = sand.u32 1, %s2065_s20  }
  0x12   : > { %s1403_s10 = sshll.u32 %s203_s9, 7  ;;  %s1490_s11 = sshll.u32 %s2073_s22, 11 }
  0x13   : > { %s2659_s8 = scalar_select %p2173_p11, 1, 0 }
  0x14   : > { %s2184_s14 = scalar_lea.hbm %s2649_s0, %s1490_s11  ;;  %s207_s15 = scalar_lea.vmem [#allocation2], %s1403_s10 }
  0x15   : > { %s216_s16 = sshll.u32 %s207_s15, 4  ;;  %p2190_p0 = pnand %p1757_p13, %p2156_p4  ;;  %s2186_s16 = int_to_ptr.vmem [resolvable:$true] %s216_s16 }
  0x16   : > { %s2195_s24 = scalar_lea.sflag [#allocation3], %s203_s9  ;;  %s1965_s25 = scalar_lea.hbm %s2184_s14, 2048 }
  0x17   : > { %p1966_p2 = scmp.ne.s32.totalorder %s2184_s14, %s1965_s25  ;;  %p1967_p3 = pneg %p2190_p0 }
  0x18   : > { %s1970_s28 = scalar_lea.hbm %s2649_s0, 4096  ;;  %p1971_p4 = scmp.lt.u32.totalorder %s2184_s14, %s2649_s0 }
  0x19   : > { %p1968_p5 = pnand %p1967_p3, %p1966_p2  ;;  %p1972_p7 = scmp.lt.u32.totalorder %s1970_s28, %s1965_s25 }
  0x1a   : > { %p1974_p13 = scmp.lt.u32.totalorder %s1965_s25, %s2184_s14 }
  0x1b   : > { %p1969_p6 = pneg %p1968_p5  ;;  %p1973_p10 = por %p1972_p7, %p1971_p4 }
  0x1d   : > { %p1975_p12 = por %p1974_p13, %p1973_p10 }
  0x1f   : > { %p1976_p1 = pnand %p1975_p12, %p1969_p6 }
  0x21   : > { %1979 = shalt.err (!%p1976_p1)
}
  0x22   : > { %s1980_s9 = scalar_lea.vmem %s2186_s16, 2048  ;;  %s2079_s12 = smov [#allocation2]  }
  0x23   : > { %p1981_p2 = scmp.ne.s32.totalorder %s2186_s16, %s1980_s9  ;;  %s1985_s13 = sshll.u32 %s2079_s12, 4  ;;  %s1986_s13 = int_to_ptr.vmem [resolvable:$false] %s1985_s13 }
  0x24   : > { %s1987_s15 = scalar_lea.vmem %s1986_s13, 4096  ;;  %p1988_p9 = scmp.lt.s32.totalorder %s2186_s16, %s1986_s13 }
  0x25   : > { %p1983_p5 = pnand %p1981_p2, %p1967_p3  ;;  %p1989_p4 = scmp.lt.s32.totalorder %s1987_s15, %s1980_s9 }
  0x27   : > { %p1984_p11 = pneg %p1983_p5  ;;  %p1990_p7 = por %p1989_p4, %p1988_p9 }
  0x29   : > { %p1991_p10 = pnand %p1990_p7, %p1984_p11 }
  0x2b   : > { %1994 = shalt.err (!%p1991_p10)
}
  0x2c   : > { %s2080_s25 = smov 64   ;;  %s2081_s27 = smov 4  }
  0x2d   : > { %1752 = dma.hbm_to_vmem [thread:$0]  (!%p2190_p0), %s2184_s14, 2048, %s2186_s16, %s2195_s24, %s2080_s25, %s2080_s25, %s2081_s27  }
  0x2e   : > { %p224_p12 = scmp.lt.s32.totalorder %s2077_s23, 3  ;;  %p2661_p1 = scmp.ge.s32.totalorder %s2077_s23, 1 }
  0x30   : > { %p225_p3 = pnand %p2661_p1, %p224_p12 }
  0x31   : > { %s2227_s29 = sand.u32 (!%p225_p3), 1, %s2061_s19  }
  0x32   : > { %228 = sbr.rel (%p225_p3) target bundleno = 640 (0x280), region = 40  ;;  %s1407_s28 = sshll.u32 (!%p225_p3), %s2227_s29, 7 }
  0x33   : > { %s231_s10 = scalar_lea.sflag (!%p225_p3), [#allocation3], %s2227_s29  ;;  %s2233_s11 = scalar_lea.vmem (!%p225_p3), [#allocation2], %s1407_s28 }
  0x39   : > { %2048 = dma.done.wait (%p2162_p8), %s231_s10, 2048  }
  0x3a   : > { %2050 = vsyncadd (%p2162_p8), %s231_s10, 4294965248  ;;  %v1811_v0 = vld [vmem:[%s2650_s1] sm:$0xff]   ;;  %v1812_v1 = vld [vmem:[%s2650_s1 + $0x8] sm:$0xff]   ;;  %vm695_vm0 = vcmask 261120   ;;  %s2438_s10 = scalar_lea.vmem [#allocation5], %s1407_s28  ;;  %s1523_s28 = sshll.u32 %s2069_s21, 11 }
  0x3b   : > { %1661 = vmatprep.subr.bf16.mxu0 %v1811_v0  ;;  %v1813_v2 = vld [vmem:[%s2650_s1 + $0x10] sm:$0xff]   ;;  %v1814_v3 = vld [vmem:[%s2650_s1 + $0x18] sm:$0xff]   ;;  %v1819_v4 = vld [vmem:[%s2233_s11] sm:$0xff]   ;;  %s1312_s14 = sshll.u32 %s2438_s10, 4  ;;  %s2597_s24 = scalar_lea.hbm %s2654_s5, %s1523_s28  ;;  %s2599_s14 = int_to_ptr.vmem [resolvable:$true] %s1312_s14 }
  0x3c   : > { %1662 = vmatpush3.bf16.msra.mxu0 %v1811_v0  ;;  %1677 = vmatprep.mubr.bf16.mxu0 %v1819_v4  ;;  %v1815_v5 = vld [vmem:[%s2650_s1 + $0x20] sm:$0xff]   ;;  %v1816_v6 = vld [vmem:[%s2650_s1 + $0x28] sm:$0xff]   ;;  %v1817_v7 = vld [vmem:[%s2650_s1 + $0x30] sm:$0xff]   ;;  %s1297_s21 = scalar_lea.sflag [#allocation4], %s2227_s29  ;;  %s1995_s9 = scalar_lea.vmem %s2599_s14, 2048 }
  0x3d   : > { %1663 = vmatprep.subr.bf16.mxu0 %v1812_v1  ;;  %v1818_v8 = vld [vmem:[%s2650_s1 + $0x38] sm:$0xff]   ;;  %v1820_v9 = vld [vmem:[%s2233_s11 + $0x8] sm:$0xff]   ;;  %v1821_v10 = vld [vmem:[%s2233_s11 + $0x10] sm:$0xff]   ;;  %p1996_p8 = scmp.ne.s32.totalorder %s2599_s14, %s1995_s9  ;;  %p2664_p9 = scmp.ne.s32.totalorder %s2658_s6, 0 }
  0x3e   : > { %v1822_v11 = vld [vmem:[%s2233_s11 + $0x18] sm:$0xff]   ;;  %v1823_v12 = vld [vmem:[%s2233_s11 + $0x20] sm:$0xff]   ;;  %v1824_v13 = vld [vmem:[%s2233_s11 + $0x28] sm:$0xff]   ;;  %s2082_s12 = smov [#allocation5]  }
  0x3f   : > { %v1825_v14 = vld [vmem:[%s2233_s11 + $0x30] sm:$0xff]   ;;  %v1826_v15 = vld [vmem:[%s2233_s11 + $0x38] sm:$0xff]   ;;  %v1827_v16 = vld [vmem:[%s2233_s11 + $0x40] sm:$0xff]   ;;  %p1997_p11 = pnand %p1996_p8, %p2664_p9  ;;  %s1999_s13 = sshll.u32 %s2082_s12, 4  ;;  %s2000_s13 = int_to_ptr.vmem [resolvable:$false] %s1999_s13 }
  0x40   : > { %1664 = vmatpush3.bf16.msra.mxu0 %v1812_v1  ;;  %v1828_v17 = vld [vmem:[%s2233_s11 + $0x48] sm:$0xff]   ;;  %v1829_v18 = vld [vmem:[%s2233_s11 + $0x50] sm:$0xff]   ;;  %v1830_v19 = vld [vmem:[%s2233_s11 + $0x58] sm:$0xff]   ;;  %s2001_s30 = scalar_lea.vmem %s2000_s13, 4096  ;;  %p2002_p6 = scmp.lt.s32.totalorder %s2599_s14, %s2000_s13 }
  0x41   : > { %1665 = vmatprep.subr.bf16.mxu0 %v1813_v2  ;;  %v1831_v20 = vld [vmem:[%s2233_s11 + $0x60] sm:$0xff]   ;;  %v1832_v21 = vld [vmem:[%s2233_s11 + $0x68] sm:$0xff]   ;;  %v1833_v22 = vld [vmem:[%s2233_s11 + $0x70] sm:$0xff]   ;;  %p1998_p0 = pneg %p1997_p11  ;;  %p2003_p13 = scmp.lt.s32.totalorder %s2001_s30, %s1995_s9 }
  0x42   : > { %v1834_v23 = vld [vmem:[%s2233_s11 + $0x78] sm:$0xff]   ;;  %v1835_v24 = vld [vmem:[%s2652_s3] sm:$0xff]   ;;  %v1836_v25 = vld [vmem:[%s2652_s3 + $0x8] sm:$0xff]  }
  0x43   : > { %1709 = vmatprep.subr.bf16.mxu1 %v1835_v24  ;;  %v2288_v26 = vld [vmem:[%s2651_s2] ss:$0 sm:$0xff]  ;;  %p2004_p2 = por %p2003_p13, %p2002_p6 }
  0x44   : > { %1666 = vmatpush3.bf16.msra.mxu0 %v1813_v2  ;;  %1710 = vmatpush3.bf16.msra.mxu1 %v1835_v24 }
  0x45   : > { %1667 = vmatprep.subr.bf16.mxu0 %v1814_v3  ;;  %1711 = vmatprep.subr.bf16.mxu1 %v1836_v25  ;;  %p2005_p5 = pnand %p2004_p2, %p1998_p0 }
  0x48   : > { %1668 = vmatpush3.bf16.msra.mxu0 %v1814_v3  ;;  %1712 = vmatpush3.bf16.msra.mxu1 %v1836_v25 }
  0x49   : > { %1669 = vmatprep.subr.bf16.mxu0 %v1815_v5 }
  0x4c   : > { %1670 = vmatpush3.bf16.msra.mxu0 %v1815_v5 }
  0x4d   : > { %1671 = vmatprep.subr.bf16.mxu0 %v1816_v6 }
  0x50   : > { %1672 = vmatpush3.bf16.msra.mxu0 %v1816_v6 }
  0x51   : > { %1673 = vmatprep.subr.bf16.mxu0 %v1817_v7 }
  0x54   : > { %1674 = vmatpush3.bf16.msra.mxu0 %v1817_v7 }
  0x55   : > { %1675 = vmatprep.subr.bf16.mxu0 %v1818_v8 }
  0x58   : > { %1676 = vmatpush3.bf16.msra.mxu0 %v1818_v8 }
  0x5b   : > { %1678 = vmatmul.mubr.bf16.vlgmr.msra.gmra.mrb[0].mxu0 %v1820_v9 }
  0x5c   : > { %1681 = vmatprep.mubr.bf16.mxu0 %v1821_v10 }
  0x63   : > { %1682 = vmatmul.mubr.bf16.gmra.mrb[4].mxu0 %v1822_v11 }
  0x64   : > { %1685 = vmatprep.mubr.bf16.mxu0 %v1823_v12 }
  0x6b   : > { %1686 = vmatmul.mubr.bf16.gmra.mrb[8].mxu0 %v1824_v13 }
  0x6c   : > { %1689 = vmatprep.mubr.bf16.mxu0 %v1825_v14 }
  0x73   : > { %1690 = vmatmul.mubr.bf16.gmra.mrb[12].mxu0 %v1826_v15 }
  0x74   : > { %1693 = vmatprep.mubr.bf16.mxu0 %v1827_v16 }
  0x7b   : > { %1694 = vmatmul.mubr.bf16.gmra.mrb[16].mxu0 %v1828_v17 }
  0x7c   : > { %1697 = vmatprep.mubr.bf16.mxu0 %v1829_v18 }
  0x83   : > { %1698 = vmatmul.mubr.bf16.gmra.mrb[20].mxu0 %v1830_v19 }
  0x84   : > { %1701 = vmatprep.mubr.bf16.mxu0 %v1831_v20 }
  0x8b   : > { %1702 = vmatmul.mubr.bf16.gmra.mrb[24].mxu0 %v1832_v21 }
  0x8c   : > { %1705 = vmatprep.mubr.bf16.mxu0 %v1833_v22 }
  0x93   : > { %1706 = vmatmul.mubr.bf16.gmra.mrb[28].mxu0 %v1834_v23 }
 0x12e   : > { %v1679_v27 = vpop.f32.mrb[0].mxu0 }
 0x12f   : > { %v506_v28 = vadd.f32 %v1679_v27, %v2288_v26  ;;  %v497_v29 = vpop.f32.mrb[1].mxu0 }
 0x130   : > { %v498_v30 = vadd.f32 %v2288_v26, %v497_v29  ;;  %v1680_v31 = vpop.f32.mrb[2].mxu0 }
 0x131   : > { %v509_v32 = vadd.f32 %v1680_v31, %v2288_v26  ;;  %v500_v33 = vpop.f32.mrb[3].mxu0  ;;  %v626_v35 = vmax.f32 %v506_v28, 0.0 }
 0x132   : > { %v501_v34 = vadd.f32 %v2288_v26, %v500_v33  ;;  %v624_v37 = vmax.f32 %v498_v30, 0.0 }
 0x133   : > { %v627_v36 = vmax.f32 %v509_v32, 0.0 }
 0x134   : > { %v625_v38 = vmax.f32 %v501_v34, 0.0 }
 0x135   : > { %v657_v39 = vpack.c.bf16 %v627_v36, %v626_v35 }
 0x136   : > { %v1683_v40 = vpop.f32.mrb[4].mxu0  ;;  %v656_v41 = vpack.c.bf16 %v625_v38, %v624_v37 }
 0x137   : > { %v522_v42 = vadd.f32 %v1683_v40, %v2288_v26  ;;  %v513_v43 = vpop.f32.mrb[5].mxu0 }
 0x138   : > { %v514_v44 = vadd.f32 %v2288_v26, %v513_v43  ;;  %v1684_v45 = vpop.f32.mrb[6].mxu0  ;;  %1713 = vmatprep.mubr.msk.bf16.mxu1 %vm695_vm0, %v656_v41 }
 0x139   : > { %v525_v46 = vadd.f32 %v1684_v45, %v2288_v26  ;;  %v516_v47 = vpop.f32.mrb[7].mxu0  ;;  %1714 = vmatmul.mubr.msk.bf16.vlgmr.msra.gmra.mrb[0].mxu1 %vm695_vm0, %v657_v39  ;;  %v630_v49 = vmax.f32 %v522_v42, 0.0 }
 0x13a   : > { %v517_v48 = vadd.f32 %v2288_v26, %v516_v47  ;;  %v628_v51 = vmax.f32 %v514_v44, 0.0 }
 0x13b   : > { %v631_v50 = vmax.f32 %v525_v46, 0.0 }
 0x13c   : > { %v629_v52 = vmax.f32 %v517_v48, 0.0 }
 0x13d   : > { %v659_v53 = vpack.c.bf16 %v631_v50, %v630_v49 }
 0x13e   : > { %v658_v54 = vpack.c.bf16 %v629_v52, %v628_v51  ;;  %v1687_v55 = vpop.f32.mrb[8].mxu0 }
 0x13f   : > { %v538_v56 = vadd.f32 %v1687_v55, %v2288_v26  ;;  %v529_v57 = vpop.f32.mrb[9].mxu0 }
 0x140   : > { %v530_v58 = vadd.f32 %v2288_v26, %v529_v57  ;;  %v1688_v59 = vpop.f32.mrb[10].mxu0  ;;  %1717 = vmatprep.mubr.msk.bf16.mxu1 %vm695_vm0, %v658_v54 }
 0x141   : > { %v541_v60 = vadd.f32 %v1688_v59, %v2288_v26  ;;  %v532_v61 = vpop.f32.mrb[11].mxu0  ;;  %1718 = vmatmul.mubr.msk.bf16.gmra.mrb[4].mxu1 %vm695_vm0, %v659_v53  ;;  %v634_v63 = vmax.f32 %v538_v56, 0.0 }
 0x142   : > { %v533_v62 = vadd.f32 %v2288_v26, %v532_v61  ;;  %v632_v1 = vmax.f32 %v530_v58, 0.0 }
 0x143   : > { %v635_v0 = vmax.f32 %v541_v60, 0.0 }
 0x144   : > { %v633_v2 = vmax.f32 %v533_v62, 0.0 }
 0x145   : > { %v661_v3 = vpack.c.bf16 %v635_v0, %v634_v63 }
 0x146   : > { %v660_v4 = vpack.c.bf16 %v633_v2, %v632_v1  ;;  %v1691_v5 = vpop.f32.mrb[12].mxu0 }
 0x147   : > { %v554_v6 = vadd.f32 %v1691_v5, %v2288_v26  ;;  %v545_v7 = vpop.f32.mrb[13].mxu0 }
 0x148   : > { %v546_v8 = vadd.f32 %v2288_v26, %v545_v7  ;;  %v1692_v9 = vpop.f32.mrb[14].mxu0  ;;  %1721 = vmatprep.mubr.msk.bf16.mxu1 %vm695_vm0, %v660_v4 }
 0x149   : > { %v557_v10 = vadd.f32 %v1692_v9, %v2288_v26  ;;  %v548_v11 = vpop.f32.mrb[15].mxu0  ;;  %1722 = vmatmul.mubr.msk.bf16.gmra.mrb[8].mxu1 %vm695_vm0, %v661_v3  ;;  %v638_v13 = vmax.f32 %v554_v6, 0.0 }
 0x14a   : > { %v549_v12 = vadd.f32 %v2288_v26, %v548_v11  ;;  %v636_v15 = vmax.f32 %v546_v8, 0.0 }
 0x14b   : > { %v639_v14 = vmax.f32 %v557_v10, 0.0 }
 0x14c   : > { %v637_v16 = vmax.f32 %v549_v12, 0.0  ;;  %v2341_v12 = vld [vmem:[%s2653_s4] ss:$0 sm:$0xff] }
 0x14d   : > { %v663_v17 = vpack.c.bf16 %v639_v14, %v638_v13 }
 0x14e   : > { %v662_v18 = vpack.c.bf16 %v637_v16, %v636_v15  ;;  %v1695_v19 = vpop.f32.mrb[16].mxu0 }
 0x14f   : > { %v570_v20 = vadd.f32 %v1695_v19, %v2288_v26  ;;  %v561_v21 = vpop.f32.mrb[17].mxu0 }
 0x150   : > { %v562_v22 = vadd.f32 %v2288_v26, %v561_v21  ;;  %v1696_v23 = vpop.f32.mrb[18].mxu0  ;;  %1725 = vmatprep.mubr.msk.bf16.mxu1 %vm695_vm0, %v662_v18 }
 0x151   : > { %v573_v24 = vadd.f32 %v1696_v23, %v2288_v26  ;;  %v564_v25 = vpop.f32.mrb[19].mxu0  ;;  %1726 = vmatmul.mubr.msk.bf16.gmra.mrb[12].mxu1 %vm695_vm0, %v663_v17  ;;  %v642_v28 = vmax.f32 %v570_v20, 0.0 }
 0x152   : > { %v565_v27 = vadd.f32 %v2288_v26, %v564_v25  ;;  %v640_v30 = vmax.f32 %v562_v22, 0.0 }
 0x153   : > { %v643_v29 = vmax.f32 %v573_v24, 0.0 }
 0x154   : > { %v641_v31 = vmax.f32 %v565_v27, 0.0 }
 0x155   : > { %v665_v32 = vpack.c.bf16 %v643_v29, %v642_v28 }
 0x156   : > { %v664_v33 = vpack.c.bf16 %v641_v31, %v640_v30  ;;  %v1699_v34 = vpop.f32.mrb[20].mxu0 }
 0x157   : > { %v586_v35 = vadd.f32 %v1699_v34, %v2288_v26  ;;  %v577_v36 = vpop.f32.mrb[21].mxu0 }
 0x158   : > { %v578_v37 = vadd.f32 %v2288_v26, %v577_v36  ;;  %v1700_v38 = vpop.f32.mrb[22].mxu0  ;;  %1729 = vmatprep.mubr.msk.bf16.mxu1 %vm695_vm0, %v664_v33 }
 0x159   : > { %v589_v39 = vadd.f32 %v1700_v38, %v2288_v26  ;;  %v580_v40 = vpop.f32.mrb[23].mxu0  ;;  %1730 = vmatmul.mubr.msk.bf16.gmra.mrb[16].mxu1 %vm695_vm0, %v665_v32  ;;  %v646_v42 = vmax.f32 %v586_v35, 0.0 }
 0x15a   : > { %v581_v41 = vadd.f32 %v2288_v26, %v580_v40  ;;  %v644_v44 = vmax.f32 %v578_v37, 0.0 }
 0x15b   : > { %v647_v43 = vmax.f32 %v589_v39, 0.0 }
 0x15c   : > { %v645_v45 = vmax.f32 %v581_v41, 0.0 }
 0x15d   : > { %v667_v46 = vpack.c.bf16 %v647_v43, %v646_v42 }
 0x15e   : > { %v666_v47 = vpack.c.bf16 %v645_v45, %v644_v44  ;;  %v1703_v48 = vpop.f32.mrb[24].mxu0 }
 0x15f   : > { %v602_v49 = vadd.f32 %v1703_v48, %v2288_v26  ;;  %v593_v50 = vpop.f32.mrb[25].mxu0 }
 0x160   : > { %v594_v51 = vadd.f32 %v2288_v26, %v593_v50  ;;  %v1704_v52 = vpop.f32.mrb[26].mxu0  ;;  %1733 = vmatprep.mubr.msk.bf16.mxu1 %vm695_vm0, %v666_v47 }
 0x161   : > { %v605_v53 = vadd.f32 %v1704_v52, %v2288_v26  ;;  %v596_v54 = vpop.f32.mrb[27].mxu0  ;;  %1734 = vmatmul.mubr.msk.bf16.gmra.mrb[20].mxu1 %vm695_vm0, %v667_v46  ;;  %v650_v56 = vmax.f32 %v602_v49, 0.0  ;;  %v905_v52 = vlaneseq }
 0x162   : > { %v597_v55 = vadd.f32 %v2288_v26, %v596_v54  ;;  %v648_v58 = vmax.f32 %v594_v51, 0.0 }
 0x163   : > { %v651_v57 = vmax.f32 %v605_v53, 0.0 }
 0x164   : > { %v649_v59 = vmax.f32 %v597_v55, 0.0 }
 0x165   : > { %v669_v60 = vpack.c.bf16 %v651_v57, %v650_v56 }
 0x166   : > { %v668_v61 = vpack.c.bf16 %v649_v59, %v648_v58  ;;  %v1707_v62 = vpop.f32.mrb[28].mxu0 }
 0x167   : > { %v618_v63 = vadd.f32 %v1707_v62, %v2288_v26  ;;  %v609_v0 = vpop.f32.mrb[29].mxu0 }
 0x168   : > { %v610_v1 = vadd.f32 %v2288_v26, %v609_v0  ;;  %v1708_v2 = vpop.f32.mrb[30].mxu0  ;;  %1737 = vmatprep.mubr.msk.bf16.mxu1 %vm695_vm0, %v668_v61 }
 0x169   : > { %v621_v3 = vadd.f32 %v1708_v2, %v2288_v26  ;;  %v612_v4 = vpop.f32.mrb[31].mxu0  ;;  %1738 = vmatmul.mubr.msk.bf16.gmra.mrb[24].mxu1 %vm695_vm0, %v669_v60  ;;  %v654_v6 = vmax.f32 %v618_v63, 0.0 }
 0x16a   : > { %v613_v5 = vadd.f32 %v2288_v26, %v612_v4  ;;  %v652_v8 = vmax.f32 %v610_v1, 0.0  ;;  %v906_v4 = vand.u32 127, %v905_v52 }
 0x16b   : > { %v655_v7 = vmax.f32 %v621_v3, 0.0 }
 0x16c   : > { %v653_v9 = vmax.f32 %v613_v5, 0.0  ;;  %vm907_vm1 = vcmp.ge.s32.totalorder %v906_v4, 54  ;;  %vm908_vm2 = vcmp.lt.s32.totalorder %v906_v4, 63 }
 0x16d   : > { %v671_v10 = vpack.c.bf16 %v655_v7, %v654_v6  ;;  %vm2408_vm3 = vmand %vm907_vm1, %vm908_vm2 }
 0x16e   : > { %v670_v11 = vpack.c.bf16 %v653_v9, %v652_v8 }
 0x170   : > { %1741 = vmatprep.mubr.msk.bf16.mxu1 %vm695_vm0, %v670_v11 }
 0x171   : > { %1742 = vmatmul.mubr.msk.bf16.gmra.mrb[28].mxu1 %vm695_vm0, %v671_v10 }
 0x20c   : > { %v1715_v13 = vpop.f32.mrb[0].mxu1 }
 0x20d   : > { %v2344_v14 = vadd.f32 %v1715_v13, %v2341_v12  ;;  %v778_v26 = vpop.f32.mrb[1].mxu1 }
 0x20e   : > { %v2347_v15 = vadd.f32 %v2341_v12, %v778_v26  ;;  %v1716_v16 = vpop.f32.mrb[2].mxu1 }
 0x20f   : > { %v912_v17 = vmax.f32 %v2344_v14, -30.0  ;;  %v2351_v18 = vadd.f32 %v1716_v16, %v2341_v12  ;;  %v781_v19 = vpop.f32.mrb[3].mxu1 }
 0x210   : > { %v910_v20 = vmax.f32 %v2347_v15, -30.0  ;;  %v2355_v21 = vadd.f32 %v2341_v12, %v781_v19 }
 0x211   : > { %v944_v22 = vsub.f32 0.0, %v912_v17  ;;  %v913_v23 = vmax.f32 %v2351_v18, -30.0 }
 0x212   : > { %v942_v24 = vsub.f32 0.0, %v910_v20  ;;  %v911_v25 = vmax.f32 %v2355_v21, -30.0 }
 0x213   : > { %v978_v27 = vmul.f32 1.442695, %v944_v22  ;;  %v945_v28 = vsub.f32 0.0, %v913_v23 }
 0x214   : > { %v974_v29 = vmul.f32 1.442695, %v942_v24  ;;  %v943_v30 = vsub.f32 0.0, %v911_v25  ;;  %v1719_v31 = vpop.f32.mrb[4].mxu1 }
 0x215   : > { %1837 = vpow2.f32 %v978_v27  ;;  %v980_v32 = vmul.f32 1.442695, %v945_v28  ;;  %v2360_v33 = vadd.f32 %v1719_v31, %v2341_v12  ;;  %v794_v34 = vpop.f32.mrb[5].mxu1 }
 0x216   : > { %1839 = vpow2.f32 %v974_v29  ;;  %v976_v35 = vmul.f32 1.442695, %v943_v30  ;;  %v2363_v36 = vadd.f32 %v2341_v12, %v794_v34  ;;  %v1720_v37 = vpop.f32.mrb[6].mxu1 }
 0x217   : > { %1841 = vpow2.f32 %v980_v32  ;;  %v916_v38 = vmax.f32 %v2360_v33, -30.0  ;;  %v2367_v39 = vadd.f32 %v1720_v37, %v2341_v12  ;;  %v797_v40 = vpop.f32.mrb[7].mxu1 }
 0x218   : > { %1843 = vpow2.f32 %v976_v35  ;;  %v914_v41 = vmax.f32 %v2363_v36, -30.0  ;;  %v2371_v42 = vadd.f32 %v2341_v12, %v797_v40 }
 0x219   : > { %v948_v43 = vsub.f32 0.0, %v916_v38  ;;  %v917_v44 = vmax.f32 %v2367_v39, -30.0 }
 0x21a   : > { %v946_v45 = vsub.f32 0.0, %v914_v41  ;;  %v915_v46 = vmax.f32 %v2371_v42, -30.0 }
 0x21b   : > { %v986_v47 = vmul.f32 1.442695, %v948_v43  ;;  %v949_v48 = vsub.f32 0.0, %v917_v44 }
 0x21c   : > { %v982_v49 = vmul.f32 1.442695, %v946_v45  ;;  %v947_v50 = vsub.f32 0.0, %v915_v46  ;;  %v1723_v51 = vpop.f32.mrb[8].mxu1 }
 0x21d   : > { %1845 = vpow2.f32 %v986_v47  ;;  %v988_v53 = vmul.f32 1.442695, %v949_v48  ;;  %v2376_v54 = vadd.f32 %v1723_v51, %v2341_v12  ;;  %v810_v55 = vpop.f32.mrb[9].mxu1 }
 0x21e   : > { %1847 = vpow2.f32 %v982_v49  ;;  %v984_v56 = vmul.f32 1.442695, %v947_v50  ;;  %v2379_v57 = vadd.f32 %v2341_v12, %v810_v55  ;;  %v1724_v58 = vpop.f32.mrb[10].mxu1 }
 0x21f   : > { %v1838_v59 = vpop.eup %1837  ;;  %1849 = vpow2.f32 %v988_v53  ;;  %v920_v60 = vmax.f32 %v2376_v54, -30.0  ;;  %v2383_v61 = vadd.f32 %v1724_v58, %v2341_v12  ;;  %v813_v62 = vpop.f32.mrb[11].mxu1 }
 0x220   : > { %v1840_v63 = vpop.eup %1839  ;;  %v1040_v0 = vadd.f32 1.0, %v1838_v59  ;;  %1851 = vpow2.f32 %v984_v56  ;;  %v918_v1 = vmax.f32 %v2379_v57, -30.0  ;;  %v2387_v2 = vadd.f32 %v2341_v12, %v813_v62 }
 0x221   : > { %v1842_v3 = vpop.eup %1841  ;;  %v1038_v5 = vadd.f32 1.0, %v1840_v63  ;;  %v952_v6 = vsub.f32 0.0, %v920_v60  ;;  %v921_v7 = vmax.f32 %v2383_v61, -30.0 }
 0x222   : > { %v1844_v8 = vpop.eup %1843  ;;  %1853 = vrcp.f32 %v1040_v0  ;;  %v1041_v9 = vadd.f32 1.0, %v1842_v3  ;;  %v950_v10 = vsub.f32 0.0, %v918_v1  ;;  %v919_v11 = vmax.f32 %v2387_v2, -30.0 }
 0x223   : > { %1855 = vrcp.f32 %v1038_v5  ;;  %v1039_v13 = vadd.f32 1.0, %v1844_v8  ;;  %v994_v26 = vmul.f32 1.442695, %v952_v6  ;;  %v953_v16 = vsub.f32 0.0, %v921_v7 }
 0x224   : > { %1857 = vrcp.f32 %v1041_v9  ;;  %v990_v17 = vmul.f32 1.442695, %v950_v10  ;;  %v951_v19 = vsub.f32 0.0, %v919_v11  ;;  %v1727_v20 = vpop.f32.mrb[12].mxu1 }
 0x225   : > { %1859 = vrcp.f32 %v1039_v13  ;;  %v996_v22 = vmul.f32 1.442695, %v953_v16  ;;  %v2392_v23 = vadd.f32 %v1727_v20, %v2341_v12  ;;  %v826_v24 = vpop.f32.mrb[13].mxu1 }
 0x226   : > { %1861 = vpow2.f32 %v994_v26  ;;  %v992_v25 = vmul.f32 1.442695, %v951_v19  ;;  %v2395_v27 = vadd.f32 %v2341_v12, %v826_v24  ;;  %v1728_v28 = vpop.f32.mrb[14].mxu1 }
 0x227   : > { %v1846_v29 = vpop.eup %1845  ;;  %1863 = vpow2.f32 %v990_v17  ;;  %v924_v30 = vmax.f32 %v2392_v23, -30.0  ;;  %v2399_v31 = vadd.f32 %v1728_v28, %v2341_v12  ;;  %v829_v32 = vpop.f32.mrb[15].mxu1 }
 0x228   : > { %v1848_v34 = vpop.eup %1847  ;;  %v1044_v35 = vadd.f32 1.0, %v1846_v29  ;;  %1865 = vpow2.f32 %v996_v22  ;;  %v922_v37 = vmax.f32 %v2395_v27, -30.0  ;;  %v2403_v38 = vadd.f32 %v2341_v12, %v829_v32 }
 0x229   : > { %v1850_v40 = vpop.eup %1849  ;;  %v1042_v41 = vadd.f32 1.0, %v1848_v34  ;;  %1867 = vpow2.f32 %v992_v25  ;;  %v956_v43 = vsub.f32 0.0, %v924_v30  ;;  %v925_v44 = vmax.f32 %v2399_v31, -30.0 }
 0x22a   : > { %v1852_v45 = vpop.eup %1851  ;;  %1869 = vrcp.f32 %v1044_v35  ;;  %v1045_v47 = vadd.f32 1.0, %v1850_v40  ;;  %v954_v48 = vsub.f32 0.0, %v922_v37  ;;  %v923_v49 = vmax.f32 %v2403_v38, -30.0 }
 0x22b   : > { %1871 = vrcp.f32 %v1042_v41  ;;  %v1043_v50 = vadd.f32 1.0, %v1852_v45  ;;  %v1002_v51 = vmul.f32 1.442695, %v956_v43  ;;  %v957_v52 = vsub.f32 0.0, %v925_v44 }
 0x22c   : > { %v1854_v53 = vpop.eup %1853  ;;  %1873 = vrcp.f32 %v1045_v47  ;;  %v998_v55 = vmul.f32 1.442695, %v954_v48  ;;  %v955_v56 = vsub.f32 0.0, %v923_v49  ;;  %v1731_v58 = vpop.f32.mrb[16].mxu1 }
 0x22d   : > { %v1856_v59 = vpop.eup %1855  ;;  %v1106_v60 = vsel %vm2408_vm3, %v1854_v53, %v2344_v14  ;;  %1875 = vrcp.f32 %v1043_v50  ;;  %v1004_v62 = vmul.f32 1.442695, %v957_v52  ;;  %v2417_v63 = vadd.f32 %v1731_v58, %v2341_v12  ;;  %v842_v0 = vpop.f32.mrb[17].mxu1 }
 0x22e   : > { %v1858_v1 = vpop.eup %1857  ;;  %v1104_v3 = vsel %vm2408_vm3, %v1856_v59, %v2347_v15  ;;  %1877 = vpow2.f32 %v1002_v51  ;;  %v1000_v4 = vmul.f32 1.442695, %v955_v56  ;;  %v2423_v5 = vadd.f32 %v2341_v12, %v842_v0  ;;  %v1732_v6 = vpop.f32.mrb[18].mxu1 }
 0x22f   : > { %v1860_v7 = vpop.eup %1859  ;;  %v1107_v14 = vsel %vm2408_vm3, %v1858_v1, %v2351_v18  ;;  %1879 = vpow2.f32 %v998_v55  ;;  %v928_v8 = vmax.f32 %v2417_v63, -30.0  ;;  %v2430_v9 = vadd.f32 %v1732_v6, %v2341_v12  ;;  %v845_v10 = vpop.f32.mrb[19].mxu1 }
 0x230   : > { %v1862_v15 = vpop.eup %1861  ;;  %v1532_v11 = vpack.c.bf16 %v1107_v14, %v1106_v60  ;;  %v1105_v13 = vsel %vm2408_vm3, %v1860_v7, %v2355_v21  ;;  %1881 = vpow2.f32 %v1004_v62  ;;  %v926_v26 = vmax.f32 %v2423_v5, -30.0 }
 0x231   : > { %v1864_v16 = vpop.eup %1863  ;;  %v1527_v17 = vpack.c.bf16 %v1105_v13, %v1104_v3  ;;  %v1048_v18 = vadd.f32 1.0, %v1862_v15  ;;  %1883 = vpow2.f32 %v1000_v4  ;;  %v960_v19 = vsub.f32 0.0, %v928_v8 }
 0x232   : > { %v1866_v20 = vpop.eup %1865  ;;  %1604 = vst [vmem:[%s2438_s10 + $0x8] sm:$0xff] %v1532_v11   ;;  %v1046_v22 = vadd.f32 1.0, %v1864_v16  ;;  %v958_v24 = vsub.f32 0.0, %v926_v26  ;;  %v929_v25 = vmax.f32 %v2430_v9, -30.0  ;;  %v2443_v21 = vadd.f32 %v2341_v12, %v845_v10 }
 0x233   : > { %v1868_v28 = vpop.eup %1867  ;;  %1528 = vst [vmem:[%s2438_s10] sm:$0xff] %v1527_v17   ;;  %1885 = vrcp.f32 %v1048_v18  ;;  %v1049_v29 = vadd.f32 1.0, %v1866_v20  ;;  %v1010_v30 = vmul.f32 1.442695, %v960_v19 }
 0x234   : > { %v1870_v32 = vpop.eup %1869  ;;  %1887 = vrcp.f32 %v1046_v22  ;;  %v1047_v34 = vadd.f32 1.0, %v1868_v28  ;;  %v1006_v35 = vmul.f32 1.442695, %v958_v24  ;;  %v961_v37 = vsub.f32 0.0, %v929_v25  ;;  %v1735_v40 = vpop.f32.mrb[20].mxu1 }
 0x235   : > { %v1872_v41 = vpop.eup %1871  ;;  %v1110_v43 = vsel %vm2408_vm3, %v1870_v32, %v2360_v33  ;;  %1889 = vrcp.f32 %v1049_v29  ;;  %v927_v44 = vmax.f32 %v2443_v21, -30.0  ;;  %v2451_v45 = vadd.f32 %v1735_v40, %v2341_v12  ;;  %v858_v47 = vpop.f32.mrb[21].mxu1 }
 0x236   : > { %v1874_v48 = vpop.eup %1873  ;;  %v1108_v49 = vsel %vm2408_vm3, %v1872_v41, %v2363_v36  ;;  %1891 = vrcp.f32 %v1047_v34  ;;  %v1012_v50 = vmul.f32 1.442695, %v961_v37  ;;  %v2457_v51 = vadd.f32 %v2341_v12, %v858_v47  ;;  %v1736_v52 = vpop.f32.mrb[22].mxu1 }
 0x237   : > { %v1876_v53 = vpop.eup %1875  ;;  %v1111_v33 = vsel %vm2408_vm3, %v1874_v48, %v2367_v39  ;;  %1893 = vpow2.f32 %v1010_v30  ;;  %v959_v55 = vsub.f32 0.0, %v927_v44  ;;  %v932_v56 = vmax.f32 %v2451_v45, -30.0  ;;  %v861_v58 = vpop.f32.mrb[23].mxu1 }
 0x238   : > { %v1878_v59 = vpop.eup %1877  ;;  %v1542_v36 = vpack.c.bf16 %v1111_v33, %v1110_v43  ;;  %v1109_v60 = vsel %vm2408_vm3, %v1876_v53, %v2371_v42  ;;  %1895 = vpow2.f32 %v1006_v35  ;;  %v930_v62 = vmax.f32 %v2457_v51, -30.0 }
 0x239   : > { %v1880_v0 = vpop.eup %1879  ;;  %v1537_v1 = vpack.c.bf16 %v1109_v60, %v1108_v49  ;;  %v1052_v3 = vadd.f32 1.0, %v1878_v59  ;;  %1897 = vpow2.f32 %v1012_v50  ;;  %v964_v6 = vsub.f32 0.0, %v932_v56 }
 0x23a   : > { %v1882_v39 = vpop.eup %1881  ;;  %1606 = vst [vmem:[%s2438_s10 + $0x18] sm:$0xff] %v1542_v36   ;;  %v1050_v4 = vadd.f32 1.0, %v1880_v0  ;;  %v962_v7 = vsub.f32 0.0, %v930_v62  ;;  %v2469_v14 = vadd.f32 %v1736_v52, %v2341_v12  ;;  %v1008_v42 = vmul.f32 1.442695, %v959_v55 }
 0x23b   : > { %v1884_v8 = vpop.eup %1883  ;;  %1605 = vst [vmem:[%s2438_s10 + $0x10] sm:$0xff] %v1537_v1   ;;  %1899 = vrcp.f32 %v1052_v3  ;;  %v1053_v10 = vadd.f32 1.0, %v1882_v39  ;;  %v2473_v15 = vadd.f32 %v2341_v12, %v861_v58  ;;  %v1018_v13 = vmul.f32 1.442695, %v964_v6 }
 0x23c   : > { %1901 = vrcp.f32 %v1050_v4  ;;  %v1051_v11 = vadd.f32 1.0, %v1884_v8  ;;  %v1014_v26 = vmul.f32 1.442695, %v962_v7  ;;  %v1739_v16 = vpop.f32.mrb[24].mxu1  ;;  %v933_v18 = vmax.f32 %v2469_v14, -30.0 }
 0x23d   : > { %v1886_v17 = vpop.eup %1885  ;;  %1903 = vrcp.f32 %v1053_v10  ;;  %v931_v19 = vmax.f32 %v2473_v15, -30.0  ;;  %v2478_v20 = vadd.f32 %v1739_v16, %v2341_v12  ;;  %v874_v22 = vpop.f32.mrb[25].mxu1 }
 0x23e   : > { %v1888_v24 = vpop.eup %1887  ;;  %v1114_v25 = vsel %vm2408_vm3, %v1886_v17, %v2376_v54  ;;  %1905 = vrcp.f32 %v1051_v11  ;;  %v2484_v28 = vadd.f32 %v2341_v12, %v874_v22  ;;  %v1740_v29 = vpop.f32.mrb[26].mxu1  ;;  %v965_v34 = vsub.f32 0.0, %v933_v18 }
 0x23f   : > { %v1890_v30 = vpop.eup %1889  ;;  %v1112_v32 = vsel %vm2408_vm3, %v1888_v24, %v2379_v57  ;;  %1907 = vpow2.f32 %v1008_v42  ;;  %v963_v35 = vsub.f32 0.0, %v931_v19  ;;  %v877_v37 = vpop.f32.mrb[27].mxu1  ;;  %v936_v41 = vmax.f32 %v2478_v20, -30.0 }
 0x240   : > { %v1892_v40 = vpop.eup %1891  ;;  %v1115_v54 = vsel %vm2408_vm3, %v1890_v30, %v2383_v61  ;;  %1909 = vpow2.f32 %v1018_v13  ;;  %v934_v43 = vmax.f32 %v2484_v28, -30.0  ;;  %v1020_v48 = vmul.f32 1.442695, %v965_v34 }
 0x241   : > { %v1894_v44 = vpop.eup %1893  ;;  %v1552_v47 = vpack.c.bf16 %v1115_v54, %v1114_v25  ;;  %v1113_v57 = vsel %vm2408_vm3, %v1892_v40, %v2387_v2  ;;  %1911 = vpow2.f32 %v1014_v26  ;;  %v1016_v53 = vmul.f32 1.442695, %v963_v35 }
 0x242   : > { %v1896_v49 = vpop.eup %1895  ;;  %v1547_v50 = vpack.c.bf16 %v1113_v57, %v1112_v32  ;;  %v1056_v52 = vadd.f32 1.0, %v1894_v44  ;;  %v968_v33 = vsub.f32 0.0, %v936_v41  ;;  %1913 = vpow2.f32 %v1020_v48 }
 0x243   : > { %v1898_v61 = vpop.eup %1897  ;;  %1608 = vst [vmem:[%s2438_s10 + $0x28] sm:$0xff] %v1552_v47   ;;  %v1054_v55 = vadd.f32 1.0, %v1896_v49  ;;  %v966_v56 = vsub.f32 0.0, %v934_v43  ;;  %v2499_v58 = vadd.f32 %v1740_v29, %v2341_v12  ;;  %v2503_v2 = vadd.f32 %v2341_v12, %v877_v37 }
 0x244   : > { %1607 = vst [vmem:[%s2438_s10 + $0x20] sm:$0xff] %v1547_v50   ;;  %1915 = vrcp.f32 %v1056_v52  ;;  %v1057_v59 = vadd.f32 1.0, %v1898_v61  ;;  %v1026_v36 = vmul.f32 1.442695, %v968_v33  ;;  %v1743_v60 = vpop.f32.mrb[28].mxu1 }
 0x245   : > { %v1900_v62 = vpop.eup %1899  ;;  %1917 = vrcp.f32 %v1054_v55  ;;  %v1022_v0 = vmul.f32 1.442695, %v966_v56  ;;  %v937_v1 = vmax.f32 %v2499_v58, -30.0  ;;  %v2507_v3 = vadd.f32 %v1743_v60, %v2341_v12  ;;  %v890_v39 = vpop.f32.mrb[29].mxu1 }
 0x246   : > { %v1902_v4 = vpop.eup %1901  ;;  %v1118_v6 = vsel %vm2408_vm3, %v1900_v62, %v2392_v23  ;;  %1919 = vrcp.f32 %v1057_v59  ;;  %v935_v7 = vmax.f32 %v2503_v2, -30.0  ;;  %v2514_v8 = vadd.f32 %v2341_v12, %v890_v39  ;;  %v1744_v10 = vpop.f32.mrb[30].mxu1 }
 0x247   : > { %v1904_v42 = vpop.eup %1903  ;;  %v1116_v11 = vsel %vm2408_vm3, %v1902_v4, %v2395_v27  ;;  %1921 = vpow2.f32 %v1016_v53  ;;  %v969_v13 = vsub.f32 0.0, %v937_v1  ;;  %v940_v26 = vmax.f32 %v2507_v3, -30.0  ;;  %v893_v16 = vpop.f32.mrb[31].mxu1 }
 0x248   : > { %v1906_v17 = vpop.eup %1905  ;;  %v1119_v23 = vsel %vm2408_vm3, %v1904_v42, %v2399_v31  ;;  %1923 = vpow2.f32 %v1026_v36  ;;  %v967_v18 = vsub.f32 0.0, %v935_v7  ;;  %v938_v19 = vmax.f32 %v2514_v8, -30.0 }
 0x249   : > { %v1908_v22 = vpop.eup %1907  ;;  %v1562_v24 = vpack.c.bf16 %v1119_v23, %v1118_v6  ;;  %v1117_v27 = vsel %vm2408_vm3, %v1906_v17, %v2403_v38  ;;  %1925 = vpow2.f32 %v1022_v0  ;;  %v1028_v25 = vmul.f32 1.442695, %v969_v13 }
 0x24a   : > { %v1910_v29 = vpop.eup %1909  ;;  %v1557_v30 = vpack.c.bf16 %v1117_v27, %v1116_v11  ;;  %v1055_v32 = vadd.f32 1.0, %v1908_v22  ;;  %v1024_v34 = vmul.f32 1.442695, %v967_v18  ;;  %v972_v35 = vsub.f32 0.0, %v940_v26 }
 0x24b   : > { %v1912_v37 = vpop.eup %1911  ;;  %1610 = vst [vmem:[%s2438_s10 + $0x38] sm:$0xff] %v1562_v24   ;;  %v1060_v31 = vadd.f32 1.0, %v1910_v29  ;;  %1927 = vpow2.f32 %v1028_v25  ;;  %v970_v40 = vsub.f32 0.0, %v938_v19  ;;  %v2529_v54 = vadd.f32 %v1744_v10, %v2341_v12 }
 0x24c   : > { %1609 = vst [vmem:[%s2438_s10 + $0x30] sm:$0xff] %v1557_v30   ;;  %1929 = vrcp.f32 %v1055_v32  ;;  %v1058_v41 = vadd.f32 1.0, %v1912_v37  ;;  %v2533_v38 = vadd.f32 %v2341_v12, %v893_v16  ;;  %v1914_v43 = vpop.eup %1913  ;;  %v1034_v44 = vmul.f32 1.442695, %v972_v35 }
 0x24d   : > { %1931 = vrcp.f32 %v1060_v31  ;;  %v941_v47 = vmax.f32 %v2529_v54, -30.0  ;;  %v1061_v48 = vadd.f32 1.0, %v1914_v43  ;;  %v1030_v49 = vmul.f32 1.442695, %v970_v40 }
 0x24e   : > { %v1916_v57 = vpop.eup %1915  ;;  %1933 = vrcp.f32 %v1058_v41  ;;  %v939_v50 = vmax.f32 %v2533_v38, -30.0 }
 0x24f   : > { %v1918_v52 = vpop.eup %1917  ;;  %1935 = vpow2.f32 %v1024_v34  ;;  %v973_v53 = vsub.f32 0.0, %v941_v47  ;;  %v1122_v55 = vsel %vm2408_vm3, %v1916_v57, %v2417_v63 }
 0x250   : > { %v1920_v33 = vpop.eup %1919  ;;  %1937 = vrcp.f32 %v1061_v48  ;;  %v971_v61 = vsub.f32 0.0, %v939_v50 }
 0x251   : > { %v1922_v12 = vpop.eup %1921  ;;  %v1123_v56 = vsel %vm2408_vm3, %v1920_v33, %v2430_v9  ;;  %1939 = vpow2.f32 %v1034_v44  ;;  %v1036_v59 = vmul.f32 1.442695, %v973_v53  ;;  %v1120_v9 = vsel %vm2408_vm3, %v1918_v52, %v2423_v5 }
 0x252   : > { %v1924_v36 = vpop.eup %1923  ;;  %v1572_v60 = vpack.c.bf16 %v1123_v56, %v1122_v55  ;;  %v1059_v62 = vadd.f32 1.0, %v1922_v12  ;;  %1941 = vpow2.f32 %v1030_v49  ;;  %v1032_v39 = vmul.f32 1.442695, %v971_v61 }
 0x253   : > { %v1926_v0 = vpop.eup %1925  ;;  %v1064_v1 = vadd.f32 1.0, %v1924_v36  ;;  %1943 = vpow2.f32 %v1036_v59 }
 0x254   : > { %1612 = vst [vmem:[%s2438_s10 + $0x48] sm:$0xff] %v1572_v60   ;;  %1945 = vrcp.f32 %v1059_v62  ;;  %v1062_v63 = vadd.f32 1.0, %v1926_v0 }
 0x255   : > { %v1928_v4 = vpop.eup %1927  ;;  %1947 = vrcp.f32 %v1064_v1 }
 0x256   : > { %v1930_v6 = vpop.eup %1929  ;;  %v1065_v7 = vadd.f32 1.0, %v1928_v4  ;;  %1949 = vpow2.f32 %v1032_v39 }
 0x257   : > { %v1932_v10 = vpop.eup %1931  ;;  %v1121_v42 = vsel %vm2408_vm3, %v1930_v6, %v2443_v21 }
 0x258   : > { %v1934_v11 = vpop.eup %1933  ;;  %v1567_v13 = vpack.c.bf16 %v1121_v42, %v1120_v9  ;;  %1951 = vrcp.f32 %v1065_v7  ;;  %v1126_v18 = vsel %vm2408_vm3, %v1932_v10, %v2451_v45 }
 0x259   : > { %v1936_v26 = vpop.eup %1935  ;;  %1953 = vrcp.f32 %v1062_v63  ;;  %v1124_v30 = vsel %vm2408_vm3, %v1934_v11, %v2457_v51 }
 0x25a   : > { %v1938_v16 = vpop.eup %1937  ;;  %1611 = vst [vmem:[%s2438_s10 + $0x40] sm:$0xff] %v1567_v13   ;;  %v1063_v17 = vadd.f32 1.0, %v1936_v26 }
 0x25b   : > { %v1940_v23 = vpop.eup %1939  ;;  %v1127_v5 = vsel %vm2408_vm3, %v1938_v16, %v2469_v14 }
 0x25c   : > { %v1942_v21 = vpop.eup %1941  ;;  %v1582_v19 = vpack.c.bf16 %v1127_v5, %v1126_v18  ;;  %1955 = vrcp.f32 %v1063_v17  ;;  %v1068_v22 = vadd.f32 1.0, %v1940_v23 }
 0x25d   : > { %v1944_v24 = vpop.eup %1943  ;;  %v1066_v27 = vadd.f32 1.0, %v1942_v21 }
 0x25e   : > { %v1946_v25 = vpop.eup %1945  ;;  %1614 = vst [vmem:[%s2438_s10 + $0x58] sm:$0xff] %v1582_v19   ;;  %1957 = vrcp.f32 %v1068_v22  ;;  %v1069_v29 = vadd.f32 1.0, %v1944_v24 }
 0x25f   : > { %v1125_v45 = vsel %vm2408_vm3, %v1946_v25, %v2473_v15  ;;  %1959 = vrcp.f32 %v1066_v27  ;;  %v1948_v14 = vpop.eup %1947 }
 0x260   : > { %v1577_v32 = vpack.c.bf16 %v1125_v45, %v1124_v30  ;;  %1961 = vrcp.f32 %v1069_v29  ;;  %v1950_v34 = vpop.eup %1949  ;;  %v1130_v31 = vsel %vm2408_vm3, %v1948_v14, %v2478_v20 }
 0x261   : > { %v1067_v37 = vadd.f32 1.0, %v1950_v34 }
 0x262   : > { %v1952_v35 = vpop.eup %1951  ;;  %1613 = vst [vmem:[%s2438_s10 + $0x50] sm:$0xff] %v1577_v32  }
 0x263   : > { %v1131_v51 = vsel %vm2408_vm3, %v1952_v35, %v2499_v58  ;;  %v1954_v40 = vpop.eup %1953  ;;  %1963 = vrcp.f32 %v1067_v37 }
 0x264   : > { %v1592_v15 = vpack.c.bf16 %v1131_v51, %v1130_v31  ;;  %v1128_v43 = vsel %vm2408_vm3, %v1954_v40, %v2484_v28 }
 0x266   : > { %v1956_v41 = vpop.eup %1955  ;;  %1616 = vst [vmem:[%s2438_s10 + $0x68] sm:$0xff] %v1592_v15  }
 0x267   : > { %v1129_v20 = vsel %vm2408_vm3, %v1956_v41, %v2503_v2 }
 0x268   : > { %v1958_v44 = vpop.eup %1957  ;;  %v1587_v47 = vpack.c.bf16 %v1129_v20, %v1128_v43 }
 0x269   : > { %v1960_v58 = vpop.eup %1959  ;;  %v1134_v28 = vsel %vm2408_vm3, %v1958_v44, %v2507_v3 }
 0x26a   : > { %v1962_v57 = vpop.eup %1961  ;;  %1615 = vst [vmem:[%s2438_s10 + $0x60] sm:$0xff] %v1587_v47   ;;  %v1132_v48 = vsel %vm2408_vm3, %v1960_v58, %v2514_v8 }
 0x26b   : > { %v1135_v2 = vsel %vm2408_vm3, %v1962_v57, %v2529_v54 }
 0x26c   : > { %v1602_v49 = vpack.c.bf16 %v1135_v2, %v1134_v28 }
 0x26d   : > { %v1964_v50 = vpop.eup %1963 }
 0x26e   : > { %1618 = vst [vmem:[%s2438_s10 + $0x78] sm:$0xff] %v1602_v49   ;;  %v1133_v52 = vsel %vm2408_vm3, %v1964_v50, %v2533_v38 }
 0x26f   : > { %v1597_v3 = vpack.c.bf16 %v1133_v52, %v1132_v48 }
 0x271   : > { %1617 = vst [vmem:[%s2438_s10 + $0x70] sm:$0xff] %v1597_v3  }
 0x272   : > { %2008 = shalt.err (!%p2005_p5)
}
 0x273   : > { %s2009_s15 = scalar_lea.hbm %s2597_s24, 2048  ;;  %s2013_s27 = scalar_lea.hbm %s2654_s5, 4096 }
 0x274   : > { %p2010_p4 = scmp.ne.s32.totalorder %s2597_s24, %s2009_s15  ;;  %p2014_p12 = scmp.lt.u32.totalorder %s2597_s24, %s2654_s5 }
 0x275   : > { %p2015_p1 = scmp.lt.u32.totalorder %s2013_s27, %s2009_s15  ;;  %p2017_p8 = scmp.lt.u32.totalorder %s2009_s15, %s2597_s24 }
 0x276   : > { %p2011_p7 = pnand %p2010_p4, %p2664_p9 }
 0x277   : > { %p2016_p3 = por %p2015_p1, %p2014_p12 }
 0x278   : > { %p2012_p10 = pneg %p2011_p7 }
 0x279   : > { %p2018_p11 = por %p2017_p8, %p2016_p3 }
 0x27b   : > { %p2019_p0 = pnand %p2018_p11, %p2012_p10 }
 0x27d   : > { %2022 = shalt.err (!%p2019_p0)
}
 0x27e   : > { %s2083_s16 = smov 64   ;;  %s2084_s17 = smov 4  }
 0x27f   : > { %1747 = dma.vmem_to_hbm [thread:$0]  (%p2664_p9), %s2599_s14, 2048, %s2597_s24, %s1297_s21, %s2083_s16, %s2083_s16, %s2084_s17  }
 0x280 PF: > { %s1327_s9 = sand.u32 1, %s2057_s18   ;;  %p2665_p6 = scmp.ne.s32.totalorder %s2659_s8, 0 }
 0x281   : > { %p2666_p13 = scmp.ge.s32.totalorder %s2077_s23, 2  ;;  %s1328_s12 = scalar_lea.sflag [#allocation4], %s1327_s9 }
 0x283   : > { %p1754_p2 = pnand %p2666_p13, %p2665_p6 }
 0x285   : > { %2052 = dma.done.wait (!%p1754_p2), %s1328_s12, 2048  }
 0x286   : > { %2054 = vsyncadd (!%p1754_p2), %s1328_s12, 4294965248  ;;  %s21_s23 = sadd.s32 1, %s2077_s23   ;;  %s2667_s18 = smov %s2061_s19 }
 0x287   : > { %p18_p5 = scmp.ge.s32.totalorder %s21_s23, 4   ;;  %s2668_s19 = smov %s2065_s20 }
 0x288   : > { %s2669_s20 = smov %s2171_s7  ;;  %s2670_s21 = smov %s2073_s22 }
 0x289   : > { %s2671_s22 = smov %s2673_s26  ;;  %20 = sbr.rel (!%p18_p5) target bundleno = 6 (0x6), region = 85 }
 0x290   :  { %1333 = vsyncpa [#allocation3], 1 }
 0x291   :  { %1335 = vsyncpa [#allocation3 + $0x1], 1 }
 0x292   :  { %1336 = vsyncpa [#allocation4], 1 }
 0x293   :  { %1338 = vsyncpa [#allocation4 + $0x1], 1 }

</bundles_post_ra>
